<compile_context>
chip_gen: v7x
topology: tpu7x:2x2x1
jax: 0.10.0
libtpu: 0.0.40
codegen_flags: <defaults>
</compile_context>

<pallas_src>
import jax
import jax.numpy as jnp
import numpy as np
from jax import lax
from jax.experimental import pallas as pl
from jax.experimental.pallas import tpu as pltpu


# --------------------- trace-time weight preparation (layout plumbing) ---------------------
def _conv_pool_matrices(w_oihw, w_in, pad=1):
    """Banded conv-as-matmul matrices with the width half of the 2x2 max-pool folded in.

    Returns (mats, w_pool) where mats has shape (KH, W_in*Cin, 2*Wp*Cout):
      columns [:Wp*Cout]  pick conv output column 2*w2   ("even" corner of the pool window)
      columns [Wp*Cout:]  pick conv output column 2*w2-1 ("odd"  corner)
    Out-of-range corners map to zero columns, which is valid because ReLU follows the max.
    """
    Cout, Cin, KH, KW = w_oihw.shape
    Wo = w_in + 2 * pad - KW + 1
    Wp = Wo // 2 + 1                       # MaxPool2d(kernel=2, stride=2, padding=1) width

    # Band[kh, w_in*Cin+ci, w*Cout+co] = w[co, ci, kh, w_in - w + pad]   (if kw in range)
    wi = np.arange(w_in)[:, None]
    wo = np.arange(Wo)[None, :]
    kw = wi - wo + pad
    valid = (kw >= 0) & (kw < KW)
    kw_c = np.clip(kw, 0, KW - 1)
    w_perm = jnp.transpose(w_oihw, (2, 3, 1, 0))            # (KH, KW, Cin, Cout)
    band = w_perm[:, kw_c]                                   # (KH, W_in, Wo, Cin, Cout)
    band = jnp.where(valid[None, :, :, None, None], band, 0.0)
    band = jnp.transpose(band, (0, 1, 3, 2, 4)).reshape(KH, w_in * Cin, Wo * Cout)

    # width-direction pooling: window w2 covers conv columns {2*w2-1, 2*w2}
    sel = np.zeros((Wo * Cout, 2 * Wp * Cout), np.float32)
    for w2 in range(Wp):
        for c in range(Cout):
            if 2 * w2 < Wo:
                sel[(2 * w2) * Cout + c, w2 * Cout + c] = 1.0
            if 2 * w2 - 1 >= 0:
                sel[(2 * w2 - 1) * Cout + c, Wp * Cout + w2 * Cout + c] = 1.0
    mats = jnp.einsum('kab,bc->kac', band, jnp.asarray(sel))
    return mats.astype(jnp.float32), Wp


def prepare_params(params, in_hw, dtype=jnp.bfloat16):
    """Convert PyTorch-layout CNN params into the fused kernel's matmul layout (one-time)."""
    conv1_w, conv2_w, fc1_w, fc2_w = params
    H, W = in_hw
    KH = conv1_w.shape[2]
    cout2 = conv2_w.shape[0]
    nh = fc1_w.shape[0]

    m1, w_pool1 = _conv_pool_matrices(conv1_w, W)            # (KH, W*Cin, 2*14*Cout1)
    m2, w_pool2 = _conv_pool_matrices(conv2_w, w_pool1)      # (KH, 14*Cout1, 2*7*Cout2)
    h_conv1 = H + 2 - KH + 1                                  # 26
    h_pool1 = h_conv1 // 2 + 1                                # 14
    h_conv2 = h_pool1 + 2 - KH + 1                            # 12
    h_pool2 = h_conv2 // 2 + 1                                # 7

    # K-fused conv weights: stack the KH bands along K (matches the lane-concatenated slab)
    m1 = m1.reshape(KH * W * conv1_w.shape[1], -1).astype(dtype)        # (140, 112)
    m2 = m2.reshape(KH * w_pool1 * conv2_w.shape[1], -1).astype(dtype)  # (280, 112)

    # fc1: permute columns from PyTorch (c, h, w) flatten order to the kernel's (h, w*C+c)
    f1 = fc1_w.reshape(nh, cout2, h_pool2, w_pool2)
    f1 = jnp.transpose(f1, (2, 3, 1, 0)).reshape(h_pool2, w_pool2 * cout2, nh).astype(dtype)
    f2 = jnp.transpose(fc2_w).astype(dtype)                   # (nh, num_classes)
    return m1, m2, f1, f2


# ----------------------------------- fused forward pass -----------------------------------
def cnn_forward(x_nchw, kparams, block_b=8):
    """Fused CNN forward. `kparams` comes from prepare_params (one-time weight plumbing)."""
    m1, m2, f1, f2 = kparams
    N, Cin, H, W = x_nchw.shape
    WC = W * Cin
    KH = m1.shape[0] // WC
    num_classes = f2.shape[1]

    h_conv1 = H + 2 - KH + 1
    h_pool1 = h_conv1 // 2 + 1
    wc2 = m2.shape[0] // KH                      # w_pool1 * Cout1 (stage-2 lane width)
    h_conv2 = h_pool1 + 2 - KH + 1
    h_pool2 = f1.shape[0]

    rup = lambda v: -(-v // 8) * 8               # round conv-out rows up to a sublane tile
    r1_out, r2_out = rup(h_conv1), rup(h_conv2)  # 32, 16  (extra rows are discarded)
    pad1_bot = r1_out + KH - 1 - (H + 1)         # zero rows appended below the input (7)
    pad2_bot = r2_out + KH - 1 - (h_pool1 + 1)   # zero rows appended below pool1 out (5)

    B = min(block_b, N)                          # samples per grid step
    nb = pl.cdiv(N, B)
    Np = nb * B

    def kernel(x_ref, m1_ref, m2_ref, f1_ref, f2_ref, o_ref):
        f32, bf16 = jnp.float32, jnp.bfloat16

        def conv(act_pad, m_ref, rows_out, rows_valid):
            # act_pad: (rows, B, L) height-padded activation (zero rows top/bottom).
            # One K-fused MXU matmul: lane-concatenate the KH row-shifted slices
            # (K = KH*L) against the pre-concatenated banded weights.
            slab = jnp.concatenate(
                [act_pad[kh:kh + rows_out] for kh in range(KH)], axis=-1)
            slab = slab.reshape(rows_out * B, slab.shape[-1]).astype(bf16)
            y = jnp.dot(slab, m_ref[...], preferred_element_type=f32)
            return y.reshape(rows_out, B, y.shape[-1])[:rows_valid]

        def pool_relu(y):
            # y: (h_conv, B, 2*Wp*C) conv output; pool window h2 covers rows {2h2-1, 2h2}.
            # Height half on the VPU via a FREE leading-dim reshape (no MXU, no strided
            # access); width half is the even/odd lane-block max folded into the weights.
            # Zero stands in for the -inf pool padding because ReLU follows the max.
            h_out = y.shape[0] // 2 + 1
            wpc = y.shape[-1] // 2
            z = jnp.zeros((1, B, y.shape[-1]), f32)
            yp = jnp.concatenate([z, y, z], axis=0).reshape(h_out, 2, B, y.shape[-1])
            hp = jnp.maximum(yp[:, 0], yp[:, 1])                       # height max
            return jnp.maximum(jnp.maximum(hp[..., :wpc], hp[..., wpc:]), 0.0)

        # stage 1: conv1 + ReLU + maxpool   (in-kernel zero rows = conv1 height padding)
        x = x_ref[...]                                                  # (H, B, W*Cin) f32
        xp = jnp.concatenate(
            [jnp.zeros((1, B, WC), f32), x, jnp.zeros((pad1_bot, B, WC), f32)], axis=0)
        a2 = pool_relu(conv(xp, m1_ref, r1_out, h_conv1))               # (h_pool1, B, wc2)

        # stage 2: conv2 + ReLU + maxpool   (zero rows = conv2 height padding)
        a2p = jnp.concatenate(
            [jnp.zeros((1, B, wc2), f32), a2, jnp.zeros((pad2_bot, B, wc2), f32)], axis=0)
        p2 = pool_relu(conv(a2p, m2_ref, r2_out, h_conv2))              # (h_pool2, B, 56)

        # fc1 (+ReLU): contract the pooled rows with batched (B, 56) x (56, nh) MXU dots
        h1 = jnp.zeros((B, f1_ref.shape[-1]), f32)
        for h in range(h_pool2):
            h1 = h1 + jnp.dot(p2[h].astype(bf16), f1_ref[h], preferred_element_type=f32)
        h1 = jnp.maximum(h1, 0.0)
        # fc2 -> one lane-dense (B, num_classes) logits block per step
        o_ref[...] = jnp.dot(h1.astype(bf16), f2_ref[...], preferred_element_type=f32)

    # host-side layout plumbing only: NCHW -> (H, N, W*Cin); batch in sublanes, no host pad
    x = jnp.transpose(x_nchw, (2, 0, 3, 1)).reshape(H, N, WC)
    if Np != N:
        x = jnp.pad(x, ((0, 0), (0, Np - N), (0, 0)))

    out = pl.pallas_call(
        kernel,
        out_shape=jax.ShapeDtypeStruct((Np, num_classes), jnp.float32),
        grid=(nb,),
        in_specs=[
            pl.BlockSpec((H, B, WC), lambda n: (0, n, 0)),
            pl.BlockSpec(m1.shape, lambda n: (0, 0)),
            pl.BlockSpec(m2.shape, lambda n: (0, 0)),
            pl.BlockSpec(f1.shape, lambda n: (0, 0, 0)),
            pl.BlockSpec(f2.shape, lambda n: (0, 0)),
        ],
        out_specs=pl.BlockSpec((B, num_classes), lambda n: (n, 0)),
        compiler_params=pltpu.CompilerParams(dimension_semantics=("parallel",)),
    )(x, m1, m2, f1, f2)
    return out[:N]


# ------------------------------ pure-JAX reference (correctness) ------------------------------
def cnn_reference(x_nchw, params):
    conv1_w, conv2_w, fc1_w, fc2_w = params
    dn = ('NCHW', 'OIHW', 'NCHW')
    hp = lax.Precision.HIGHEST
    y = lax.conv_general_dilated(x_nchw, conv1_w, (1, 1), ((1, 1), (1, 1)),
                                 dimension_numbers=dn, precision=hp)
    y = jnp.maximum(y, 0.0)
    y = lax.reduce_window(y, -jnp.inf, lax.max, (1, 1, 2, 2), (1, 1, 2, 2),
                          ((0, 0), (0, 0), (1, 1), (1, 1)))
    y = lax.conv_general_dilated(y, conv2_w, (1, 1), ((1, 1), (1, 1)),
                                 dimension_numbers=dn, precision=hp)
    y = jnp.maximum(y, 0.0)
    y = lax.reduce_window(y, -jnp.inf, lax.max, (1, 1, 2, 2), (1, 1, 2, 2),
                          ((0, 0), (0, 0), (1, 1), (1, 1)))
    y = y.reshape(y.shape[0], -1)
    y = jnp.maximum(jnp.dot(y, fc1_w.T, precision=hp), 0.0)
    return jnp.dot(y, fc2_w.T, precision=hp)


if __name__ == "__main__":
    in_channels, hidden_channels, num_hiddens, num_classes = 1, 4, 32, 10
    # 28x28 input -> 7x7 after two conv+pool stages (required by fc1 in_features);
    # batch=16 with block_b=8 gives a 2-step "parallel" grid (exercises batching + megacore).
    batch, spatial = 16, 28

    key = jax.random.PRNGKey(0)
    kx, k1, k2, k3, k4 = jax.random.split(key, 5)
    x = jax.random.normal(kx, (batch, in_channels, spatial, spatial), jnp.float32)
    conv1_w = jax.random.normal(k1, (hidden_channels, in_channels, 5, 5), jnp.float32) * 0.2
    conv2_w = jax.random.normal(k2, (hidden_channels * 2, hidden_channels, 5, 5), jnp.float32) * 0.1
    fc1_w = jax.random.normal(k3, (num_hiddens, hidden_channels * 2 * 7 * 7), jnp.float32) * 0.05
    fc2_w = jax.random.normal(k4, (num_classes, num_hiddens), jnp.float32) * 0.1
    params = (conv1_w, conv2_w, fc1_w, fc2_w)

    # One-time parameter preparation (layout plumbing only, off the activation path).
    kparams = prepare_params(params, (spatial, spatial))

    fwd = jax.jit(cnn_forward)
    out = jax.block_until_ready(fwd(x, kparams))
    ref = jax.block_until_ready(cnn_reference(x, params))

    assert out.shape == (batch, num_classes)
    # Kernel runs bf16 matmul operands with f32 accumulation; reference runs at HIGHEST
    # precision, so allow a small bf16-operand-only slack.
    np.testing.assert_allclose(np.asarray(out), np.asarray(ref), atol=3e-2, rtol=3e-2)
    print("KERNEL_OK")
</pallas_src>

<mosaic_0001>
module attributes {stable_mosaic.version = 11 : i64} {
  func.func @kernel(%arg0: i32, %arg1: memref<28x8x28xf32, #tpu.memory_space<vmem>>, %arg2: memref<140x112xbf16, #tpu.memory_space<vmem>>, %arg3: memref<280x112xbf16, #tpu.memory_space<vmem>>, %arg4: memref<7x56x32xbf16, #tpu.memory_space<vmem>>, %arg5: memref<32x10xbf16, #tpu.memory_space<vmem>>, %arg6: memref<8x10xf32, #tpu.memory_space<vmem>>) attributes {dimension_semantics = [#tpu.dimension_semantics<parallel>], iteration_bounds = array<i64: 2>, scalar_prefetch = 0 : i64, scratch_operands = 0 : i64, tpu.core_type = #tpu.core_type<tc>, window_params = [{transform_indices = @transform_0, window_bounds = array<i64: 28, 8, 28>}, {pipeline_mode = #tpu.pipeline_mode<synchronous>, transform_indices = @transform_1, window_bounds = array<i64: 140, 112>}, {pipeline_mode = #tpu.pipeline_mode<synchronous>, transform_indices = @transform_2, window_bounds = array<i64: 280, 112>}, {pipeline_mode = #tpu.pipeline_mode<synchronous>, transform_indices = @transform_3, window_bounds = array<i64: 7, 56, 32>}, {pipeline_mode = #tpu.pipeline_mode<synchronous>, transform_indices = @transform_4, window_bounds = array<i64: 32, 10>}, {transform_indices = @transform_5, window_bounds = array<i64: 8, 10>}]} {
    %c0 = arith.constant 0 : index
    %c0_0 = arith.constant 0 : index
    %c0_1 = arith.constant 0 : index
    %0 = vector.load %arg1[%c0, %c0_0, %c0_1] : memref<28x8x28xf32, #tpu.memory_space<vmem>>, vector<28x8x28xf32>
    %cst = arith.constant 0.000000e+00 : f32
    %1 = vector.broadcast %cst : f32 to vector<1x8x28xf32>
    %cst_2 = arith.constant 0.000000e+00 : f32
    %2 = vector.broadcast %cst_2 : f32 to vector<7x8x28xf32>
    %3 = tpu.concatenate %1, %0, %2 in 0 : vector<1x8x28xf32>, vector<28x8x28xf32>, vector<7x8x28xf32> -> vector<36x8x28xf32>
    %4 = vector.extract_strided_slice %3 {offsets = [0, 0, 0], sizes = [32, 8, 28], strides = [1, 1, 1]} : vector<36x8x28xf32> to vector<32x8x28xf32>
    %5 = vector.extract_strided_slice %3 {offsets = [1, 0, 0], sizes = [32, 8, 28], strides = [1, 1, 1]} : vector<36x8x28xf32> to vector<32x8x28xf32>
    %6 = vector.extract_strided_slice %3 {offsets = [2, 0, 0], sizes = [32, 8, 28], strides = [1, 1, 1]} : vector<36x8x28xf32> to vector<32x8x28xf32>
    %7 = vector.extract_strided_slice %3 {offsets = [3, 0, 0], sizes = [32, 8, 28], strides = [1, 1, 1]} : vector<36x8x28xf32> to vector<32x8x28xf32>
    %8 = vector.extract_strided_slice %3 {offsets = [4, 0, 0], sizes = [32, 8, 28], strides = [1, 1, 1]} : vector<36x8x28xf32> to vector<32x8x28xf32>
    %9 = tpu.concatenate %4, %5, %6, %7, %8 in 2 : vector<32x8x28xf32>, vector<32x8x28xf32>, vector<32x8x28xf32>, vector<32x8x28xf32>, vector<32x8x28xf32> -> vector<32x8x140xf32>
    %10 = vector.shape_cast %9 : vector<32x8x140xf32> to vector<256x140xf32>
    %11 = arith.truncf %10 : vector<256x140xf32> to vector<256x140xbf16>
    %c0_3 = arith.constant 0 : index
    %c0_4 = arith.constant 0 : index
    %12 = vector.load %arg2[%c0_3, %c0_4] : memref<140x112xbf16, #tpu.memory_space<vmem>>, vector<140x112xbf16>
    %cst_5 = arith.constant dense<0.000000e+00> : vector<256x112xf32>
    %13 = tpu.matmul %11, %12, %cst_5 {dimension_numbers = #tpu.dot_dimension_numbers<[1], [0], [0], [1], [0, 0, 1, 1], [], []>} : vector<256x140xbf16>, vector<140x112xbf16>, vector<256x112xf32> -> vector<256x112xf32>
    %14 = vector.shape_cast %13 : vector<256x112xf32> to vector<32x8x112xf32>
    %15 = vector.extract_strided_slice %14 {offsets = [0, 0, 0], sizes = [26, 8, 112], strides = [1, 1, 1]} : vector<32x8x112xf32> to vector<26x8x112xf32>
    %cst_6 = arith.constant 0.000000e+00 : f32
    %16 = vector.broadcast %cst_6 : f32 to vector<1x8x112xf32>
    %17 = tpu.concatenate %16, %15, %16 in 0 : vector<1x8x112xf32>, vector<26x8x112xf32>, vector<1x8x112xf32> -> vector<28x8x112xf32>
    %18 = vector.shape_cast %17 : vector<28x8x112xf32> to vector<14x2x8x112xf32>
    %19 = vector.extract_strided_slice %18 {offsets = [0, 0, 0, 0], sizes = [14, 1, 8, 112], strides = [1, 1, 1, 1]} : vector<14x2x8x112xf32> to vector<14x1x8x112xf32>
    %20 = vector.shape_cast %19 : vector<14x1x8x112xf32> to vector<14x8x112xf32>
    %21 = vector.extract_strided_slice %18 {offsets = [0, 1, 0, 0], sizes = [14, 1, 8, 112], strides = [1, 1, 1, 1]} : vector<14x2x8x112xf32> to vector<14x1x8x112xf32>
    %22 = vector.shape_cast %21 : vector<14x1x8x112xf32> to vector<14x8x112xf32>
    %23 = arith.maximumf %20, %22 : vector<14x8x112xf32>
    %24 = vector.extract_strided_slice %23 {offsets = [0, 0, 0], sizes = [14, 8, 56], strides = [1, 1, 1]} : vector<14x8x112xf32> to vector<14x8x56xf32>
    %25 = vector.extract_strided_slice %23 {offsets = [0, 0, 56], sizes = [14, 8, 56], strides = [1, 1, 1]} : vector<14x8x112xf32> to vector<14x8x56xf32>
    %26 = arith.maximumf %24, %25 : vector<14x8x56xf32>
    %cst_7 = arith.constant 0.000000e+00 : f32
    %27 = vector.broadcast %cst_7 : f32 to vector<14x8x56xf32>
    %28 = arith.maximumf %26, %27 : vector<14x8x56xf32>
    %cst_8 = arith.constant 0.000000e+00 : f32
    %29 = vector.broadcast %cst_8 : f32 to vector<1x8x56xf32>
    %cst_9 = arith.constant 0.000000e+00 : f32
    %30 = vector.broadcast %cst_9 : f32 to vector<5x8x56xf32>
    %31 = tpu.concatenate %29, %28, %30 in 0 : vector<1x8x56xf32>, vector<14x8x56xf32>, vector<5x8x56xf32> -> vector<20x8x56xf32>
    %32 = vector.extract_strided_slice %31 {offsets = [0, 0, 0], sizes = [16, 8, 56], strides = [1, 1, 1]} : vector<20x8x56xf32> to vector<16x8x56xf32>
    %33 = vector.extract_strided_slice %31 {offsets = [1, 0, 0], sizes = [16, 8, 56], strides = [1, 1, 1]} : vector<20x8x56xf32> to vector<16x8x56xf32>
    %34 = vector.extract_strided_slice %31 {offsets = [2, 0, 0], sizes = [16, 8, 56], strides = [1, 1, 1]} : vector<20x8x56xf32> to vector<16x8x56xf32>
    %35 = vector.extract_strided_slice %31 {offsets = [3, 0, 0], sizes = [16, 8, 56], strides = [1, 1, 1]} : vector<20x8x56xf32> to vector<16x8x56xf32>
    %36 = vector.extract_strided_slice %31 {offsets = [4, 0, 0], sizes = [16, 8, 56], strides = [1, 1, 1]} : vector<20x8x56xf32> to vector<16x8x56xf32>
    %37 = tpu.concatenate %32, %33, %34, %35, %36 in 2 : vector<16x8x56xf32>, vector<16x8x56xf32>, vector<16x8x56xf32>, vector<16x8x56xf32>, vector<16x8x56xf32> -> vector<16x8x280xf32>
    %38 = vector.shape_cast %37 : vector<16x8x280xf32> to vector<128x280xf32>
    %39 = arith.truncf %38 : vector<128x280xf32> to vector<128x280xbf16>
    %c0_10 = arith.constant 0 : index
    %c0_11 = arith.constant 0 : index
    %40 = vector.load %arg3[%c0_10, %c0_11] : memref<280x112xbf16, #tpu.memory_space<vmem>>, vector<280x112xbf16>
    %cst_12 = arith.constant dense<0.000000e+00> : vector<128x112xf32>
    %41 = tpu.matmul %39, %40, %cst_12 {dimension_numbers = #tpu.dot_dimension_numbers<[1], [0], [0], [1], [0, 0, 1, 1], [], []>} : vector<128x280xbf16>, vector<280x112xbf16>, vector<128x112xf32> -> vector<128x112xf32>
    %42 = vector.shape_cast %41 : vector<128x112xf32> to vector<16x8x112xf32>
    %43 = vector.extract_strided_slice %42 {offsets = [0, 0, 0], sizes = [12, 8, 112], strides = [1, 1, 1]} : vector<16x8x112xf32> to vector<12x8x112xf32>
    %cst_13 = arith.constant 0.000000e+00 : f32
    %44 = vector.broadcast %cst_13 : f32 to vector<1x8x112xf32>
    %45 = tpu.concatenate %44, %43, %44 in 0 : vector<1x8x112xf32>, vector<12x8x112xf32>, vector<1x8x112xf32> -> vector<14x8x112xf32>
    %46 = vector.shape_cast %45 : vector<14x8x112xf32> to vector<7x2x8x112xf32>
    %47 = vector.extract_strided_slice %46 {offsets = [0, 0, 0, 0], sizes = [7, 1, 8, 112], strides = [1, 1, 1, 1]} : vector<7x2x8x112xf32> to vector<7x1x8x112xf32>
    %48 = vector.shape_cast %47 : vector<7x1x8x112xf32> to vector<7x8x112xf32>
    %49 = vector.extract_strided_slice %46 {offsets = [0, 1, 0, 0], sizes = [7, 1, 8, 112], strides = [1, 1, 1, 1]} : vector<7x2x8x112xf32> to vector<7x1x8x112xf32>
    %50 = vector.shape_cast %49 : vector<7x1x8x112xf32> to vector<7x8x112xf32>
    %51 = arith.maximumf %48, %50 : vector<7x8x112xf32>
    %52 = vector.extract_strided_slice %51 {offsets = [0, 0, 0], sizes = [7, 8, 56], strides = [1, 1, 1]} : vector<7x8x112xf32> to vector<7x8x56xf32>
    %53 = vector.extract_strided_slice %51 {offsets = [0, 0, 56], sizes = [7, 8, 56], strides = [1, 1, 1]} : vector<7x8x112xf32> to vector<7x8x56xf32>
    %54 = arith.maximumf %52, %53 : vector<7x8x56xf32>
    %cst_14 = arith.constant 0.000000e+00 : f32
    %55 = vector.broadcast %cst_14 : f32 to vector<7x8x56xf32>
    %56 = arith.maximumf %54, %55 : vector<7x8x56xf32>
    %cst_15 = arith.constant 0.000000e+00 : f32
    %57 = vector.broadcast %cst_15 : f32 to vector<8x32xf32>
    %58 = vector.extract_strided_slice %56 {offsets = [0, 0, 0], sizes = [1, 8, 56], strides = [1, 1, 1]} : vector<7x8x56xf32> to vector<1x8x56xf32>
    %59 = vector.shape_cast %58 : vector<1x8x56xf32> to vector<8x56xf32>
    %60 = arith.truncf %59 : vector<8x56xf32> to vector<8x56xbf16>
    %c0_16 = arith.constant 0 : index
    %c0_17 = arith.constant 0 : index
    %c0_18 = arith.constant 0 : index
    %61 = vector.load %arg4[%c0_16, %c0_17, %c0_18] : memref<7x56x32xbf16, #tpu.memory_space<vmem>>, vector<1x56x32xbf16>
    %62 = vector.shape_cast %61 : vector<1x56x32xbf16> to vector<56x32xbf16>
    %cst_19 = arith.constant dense<0.000000e+00> : vector<8x32xf32>
    %63 = tpu.matmul %60, %62, %cst_19 {dimension_numbers = #tpu.dot_dimension_numbers<[1], [0], [0], [1], [0, 0, 1, 1], [], []>} : vector<8x56xbf16>, vector<56x32xbf16>, vector<8x32xf32> -> vector<8x32xf32>
    %64 = arith.addf %57, %63 : vector<8x32xf32>
    %65 = vector.extract_strided_slice %56 {offsets = [1, 0, 0], sizes = [1, 8, 56], strides = [1, 1, 1]} : vector<7x8x56xf32> to vector<1x8x56xf32>
    %66 = vector.shape_cast %65 : vector<1x8x56xf32> to vector<8x56xf32>
    %67 = arith.truncf %66 : vector<8x56xf32> to vector<8x56xbf16>
    %c1 = arith.constant 1 : index
    %c0_20 = arith.constant 0 : index
    %c0_21 = arith.constant 0 : index
    %68 = vector.load %arg4[%c1, %c0_20, %c0_21] : memref<7x56x32xbf16, #tpu.memory_space<vmem>>, vector<1x56x32xbf16>
    %69 = vector.shape_cast %68 : vector<1x56x32xbf16> to vector<56x32xbf16>
    %cst_22 = arith.constant dense<0.000000e+00> : vector<8x32xf32>
    %70 = tpu.matmul %67, %69, %cst_22 {dimension_numbers = #tpu.dot_dimension_numbers<[1], [0], [0], [1], [0, 0, 1, 1], [], []>} : vector<8x56xbf16>, vector<56x32xbf16>, vector<8x32xf32> -> vector<8x32xf32>
    %71 = arith.addf %64, %70 : vector<8x32xf32>
    %72 = vector.extract_strided_slice %56 {offsets = [2, 0, 0], sizes = [1, 8, 56], strides = [1, 1, 1]} : vector<7x8x56xf32> to vector<1x8x56xf32>
    %73 = vector.shape_cast %72 : vector<1x8x56xf32> to vector<8x56xf32>
    %74 = arith.truncf %73 : vector<8x56xf32> to vector<8x56xbf16>
    %c2 = arith.constant 2 : index
    %c0_23 = arith.constant 0 : index
    %c0_24 = arith.constant 0 : index
    %75 = vector.load %arg4[%c2, %c0_23, %c0_24] : memref<7x56x32xbf16, #tpu.memory_space<vmem>>, vector<1x56x32xbf16>
    %76 = vector.shape_cast %75 : vector<1x56x32xbf16> to vector<56x32xbf16>
    %cst_25 = arith.constant dense<0.000000e+00> : vector<8x32xf32>
    %77 = tpu.matmul %74, %76, %cst_25 {dimension_numbers = #tpu.dot_dimension_numbers<[1], [0], [0], [1], [0, 0, 1, 1], [], []>} : vector<8x56xbf16>, vector<56x32xbf16>, vector<8x32xf32> -> vector<8x32xf32>
    %78 = arith.addf %71, %77 : vector<8x32xf32>
    %79 = vector.extract_strided_slice %56 {offsets = [3, 0, 0], sizes = [1, 8, 56], strides = [1, 1, 1]} : vector<7x8x56xf32> to vector<1x8x56xf32>
    %80 = vector.shape_cast %79 : vector<1x8x56xf32> to vector<8x56xf32>
    %81 = arith.truncf %80 : vector<8x56xf32> to vector<8x56xbf16>
    %c3 = arith.constant 3 : index
    %c0_26 = arith.constant 0 : index
    %c0_27 = arith.constant 0 : index
    %82 = vector.load %arg4[%c3, %c0_26, %c0_27] : memref<7x56x32xbf16, #tpu.memory_space<vmem>>, vector<1x56x32xbf16>
    %83 = vector.shape_cast %82 : vector<1x56x32xbf16> to vector<56x32xbf16>
    %cst_28 = arith.constant dense<0.000000e+00> : vector<8x32xf32>
    %84 = tpu.matmul %81, %83, %cst_28 {dimension_numbers = #tpu.dot_dimension_numbers<[1], [0], [0], [1], [0, 0, 1, 1], [], []>} : vector<8x56xbf16>, vector<56x32xbf16>, vector<8x32xf32> -> vector<8x32xf32>
    %85 = arith.addf %78, %84 : vector<8x32xf32>
    %86 = vector.extract_strided_slice %56 {offsets = [4, 0, 0], sizes = [1, 8, 56], strides = [1, 1, 1]} : vector<7x8x56xf32> to vector<1x8x56xf32>
    %87 = vector.shape_cast %86 : vector<1x8x56xf32> to vector<8x56xf32>
    %88 = arith.truncf %87 : vector<8x56xf32> to vector<8x56xbf16>
    %c4 = arith.constant 4 : index
    %c0_29 = arith.constant 0 : index
    %c0_30 = arith.constant 0 : index
    %89 = vector.load %arg4[%c4, %c0_29, %c0_30] : memref<7x56x32xbf16, #tpu.memory_space<vmem>>, vector<1x56x32xbf16>
    %90 = vector.shape_cast %89 : vector<1x56x32xbf16> to vector<56x32xbf16>
    %cst_31 = arith.constant dense<0.000000e+00> : vector<8x32xf32>
    %91 = tpu.matmul %88, %90, %cst_31 {dimension_numbers = #tpu.dot_dimension_numbers<[1], [0], [0], [1], [0, 0, 1, 1], [], []>} : vector<8x56xbf16>, vector<56x32xbf16>, vector<8x32xf32> -> vector<8x32xf32>
    %92 = arith.addf %85, %91 : vector<8x32xf32>
    %93 = vector.extract_strided_slice %56 {offsets = [5, 0, 0], sizes = [1, 8, 56], strides = [1, 1, 1]} : vector<7x8x56xf32> to vector<1x8x56xf32>
    %94 = vector.shape_cast %93 : vector<1x8x56xf32> to vector<8x56xf32>
    %95 = arith.truncf %94 : vector<8x56xf32> to vector<8x56xbf16>
    %c5 = arith.constant 5 : index
    %c0_32 = arith.constant 0 : index
    %c0_33 = arith.constant 0 : index
    %96 = vector.load %arg4[%c5, %c0_32, %c0_33] : memref<7x56x32xbf16, #tpu.memory_space<vmem>>, vector<1x56x32xbf16>
    %97 = vector.shape_cast %96 : vector<1x56x32xbf16> to vector<56x32xbf16>
    %cst_34 = arith.constant dense<0.000000e+00> : vector<8x32xf32>
    %98 = tpu.matmul %95, %97, %cst_34 {dimension_numbers = #tpu.dot_dimension_numbers<[1], [0], [0], [1], [0, 0, 1, 1], [], []>} : vector<8x56xbf16>, vector<56x32xbf16>, vector<8x32xf32> -> vector<8x32xf32>
    %99 = arith.addf %92, %98 : vector<8x32xf32>
    %100 = vector.extract_strided_slice %56 {offsets = [6, 0, 0], sizes = [1, 8, 56], strides = [1, 1, 1]} : vector<7x8x56xf32> to vector<1x8x56xf32>
    %101 = vector.shape_cast %100 : vector<1x8x56xf32> to vector<8x56xf32>
    %102 = arith.truncf %101 : vector<8x56xf32> to vector<8x56xbf16>
    %c6 = arith.constant 6 : index
    %c0_35 = arith.constant 0 : index
    %c0_36 = arith.constant 0 : index
    %103 = vector.load %arg4[%c6, %c0_35, %c0_36] : memref<7x56x32xbf16, #tpu.memory_space<vmem>>, vector<1x56x32xbf16>
    %104 = vector.shape_cast %103 : vector<1x56x32xbf16> to vector<56x32xbf16>
    %cst_37 = arith.constant dense<0.000000e+00> : vector<8x32xf32>
    %105 = tpu.matmul %102, %104, %cst_37 {dimension_numbers = #tpu.dot_dimension_numbers<[1], [0], [0], [1], [0, 0, 1, 1], [], []>} : vector<8x56xbf16>, vector<56x32xbf16>, vector<8x32xf32> -> vector<8x32xf32>
    %106 = arith.addf %99, %105 : vector<8x32xf32>
    %cst_38 = arith.constant 0.000000e+00 : f32
    %107 = vector.broadcast %cst_38 : f32 to vector<8x32xf32>
    %108 = arith.maximumf %106, %107 : vector<8x32xf32>
    %109 = arith.truncf %108 : vector<8x32xf32> to vector<8x32xbf16>
    %c0_39 = arith.constant 0 : index
    %c0_40 = arith.constant 0 : index
    %110 = vector.load %arg5[%c0_39, %c0_40] : memref<32x10xbf16, #tpu.memory_space<vmem>>, vector<32x10xbf16>
    %cst_41 = arith.constant dense<0.000000e+00> : vector<8x10xf32>
    %111 = tpu.matmul %109, %110, %cst_41 {dimension_numbers = #tpu.dot_dimension_numbers<[1], [0], [0], [1], [0, 0, 1, 1], [], []>} : vector<8x32xbf16>, vector<32x10xbf16>, vector<8x10xf32> -> vector<8x10xf32>
    %c0_42 = arith.constant 0 : index
    %c0_43 = arith.constant 0 : index
    %112 = vector.load %arg6[%c0_42, %c0_43] : memref<8x10xf32, #tpu.memory_space<vmem>>, vector<8x10xf32>
    tpu.vector_store %arg6[%c0_42, %c0_43], %111 {strides = array<i32>} : memref<8x10xf32, #tpu.memory_space<vmem>>, vector<8x10xf32>,
    return
  }
  func.func @transform_0(%arg0: i32) -> (i32, i32, i32) {
    %c0_i32 = arith.constant 0 : i32
    %c0_i32_0 = arith.constant 0 : i32
    %c0_i32_1 = arith.constant 0 : i32
    return %c0_i32, %arg0, %c0_i32_0 : i32, i32, i32
  }
  func.func @transform_1(%arg0: i32) -> (i32, i32) {
    %c0_i32 = arith.constant 0 : i32
    %c0_i32_0 = arith.constant 0 : i32
    %c0_i32_1 = arith.constant 0 : i32
    return %c0_i32, %c0_i32_0 : i32, i32
  }
  func.func @transform_2(%arg0: i32) -> (i32, i32) {
    %c0_i32 = arith.constant 0 : i32
    %c0_i32_0 = arith.constant 0 : i32
    %c0_i32_1 = arith.constant 0 : i32
    return %c0_i32, %c0_i32_0 : i32, i32
  }
  func.func @transform_3(%arg0: i32) -> (i32, i32, i32) {
    %c0_i32 = arith.constant 0 : i32
    %c0_i32_0 = arith.constant 0 : i32
    %c0_i32_1 = arith.constant 0 : i32
    %c0_i32_2 = arith.constant 0 : i32
    return %c0_i32, %c0_i32_0, %c0_i32_1 : i32, i32, i32
  }
  func.func @transform_4(%arg0: i32) -> (i32, i32) {
    %c0_i32 = arith.constant 0 : i32
    %c0_i32_0 = arith.constant 0 : i32
    %c0_i32_1 = arith.constant 0 : i32
    return %c0_i32, %c0_i32_0 : i32, i32
  }
  func.func @transform_5(%arg0: i32) -> (i32, i32) {
    %c0_i32 = arith.constant 0 : i32
    %c0_i32_0 = arith.constant 0 : i32
    return %arg0, %c0_i32 : i32, i32
  }
}

</mosaic_0001>

<bundles_post_ra>
// kernel: cnn_forward.1
= control target key start
LH: loop header
LB: loop body
LE: loop exit
PB: predicated region body
PF: predicated region fallthrough
CT: control target
= control target key end

     0   :  { %10 = vsyncpa [#allocation4], 0  ;;  %s4719_s0 = inlined_call_operand.vmem [shape: f32[28,16,28], index: 0, kind: input, shape index: {}]   ;;  %s4720_s1 = inlined_call_operand.vmem [shape: bf16[140,112], index: 1, kind: input, shape index: {}]   ;;  %s4721_s2 = inlined_call_operand.vmem [shape: bf16[280,112], index: 2, kind: input, shape index: {}]   ;;  %s4722_s3 = inlined_call_operand.vmem [shape: bf16[7,56,32], index: 3, kind: input, shape index: {}]   ;;  %s4723_s4 = inlined_call_operand.vmem [shape: bf16[32,10], index: 4, kind: input, shape index: {}]   ;;  %s4724_s5 = inlined_call_operand.hbm [shape: f32[16,10], index: 5, kind: output, shape index: {}]  }
   0x1   :  { %12 = vsyncpa [#allocation4 + $0x1], 0  ;;  %s3644_s18 = smov 0   ;;  %s3646_s19 = smov 0  }
   0x2   :  { %s3648_s20 = smov 0   ;;  %s3650_s21 = smov 0  }
   0x3 LB: > { %s2612_s22 = sadd.s32 4294967295, %s3601_s21   ;;  %s2613_s23 = sadd.s32 4294967294, %s3601_s21   ;;  %s3601_s21 = sphi %s3650_s21, %s4730_s21   ;;  %s3597_s20 = sphi %s3648_s20, %s4729_s20   ;;  %s3593_s19 = sphi %s3646_s19, %s4728_s19   ;;  %s3589_s18 = sphi %s3644_s18, %s4727_s18  }
   0x4   : > { %s3667_s24 = sadd.s32 1, %s3601_s21   ;;  %s25_s25 = sadd.s32 1, %s3597_s20 }
   0x5   : > { %s22_s26 = ssub.s32 %s3601_s21, %s3667_s24  ;;  %p32_p0 = scmp.ne.s32.totalorder %s3597_s20, %s3593_s19 }
   0x6   : > { %p23_p1 = scmp.eq.s32.totalorder %s22_s26, 0  ;;  %p33_p2 = scmp.eq.s32.totalorder %s3601_s21, 0 }
   0x7   : > { %p146_p3 = scmp.eq.s32.totalorder %s2612_s22, 1  ;;  %p151_p4 = scmp.ne.s32.totalorder %s3593_s19, %s3589_s18 }
   0x8   : > { %s3680_s27 = scalar_select %p23_p1, %s3597_s20, %s25_s25  }
   0x9   : > { %p34_p5 = por %p33_p2, %p32_p0  ;;  %p3682_p6 = por %p146_p3, %p32_p0 }
   0xa   : > { %p152_p7 = scmp.eq.s32.totalorder %s2613_s23, 1  ;;  %p2615_p9 = scmp.ge.s32.totalorder %s3601_s21, 2 }
   0xc   : > { %p3686_p8 = por %p152_p7, %p151_p4  ;;  %180 = sbr.rel (%p2615_p9) target bundleno = 37 (0x25), region = 32 }
  0x13   : > { %183 = sbr.rel (!%p34_p5) target bundleno = 37 (0x25), region = 36  ;;  %s185_s30 = sand.u32 (%p34_p5), 1, %s3597_s20  }
  0x14   : > { %s2616_s6 = sshll.u32 (%p34_p5), %s3601_s21, 3  ;;  %s3003_s7 = smul.u32 (%p34_p5), 224, %s185_s30 }
  0x15   : > { %s3698_s10 = scalar_lea.vmem (%p34_p5), %s4719_s0, %s2616_s6 }
  0x16   : > { %v271_v0 = vld [vmem:[%s3698_s10] sm:$0xff] (%p34_p5)  ;;  %v273_v1 = vld [vmem:[%s3698_s10 + $0x10] sm:$0xff] (%p34_p5)  ;;  %s3706_s11 = scalar_lea.vmem (%p34_p5), [#allocation2], %s3003_s7 }
  0x17   : > { %v275_v2 = vld [vmem:[%s3698_s10 + $0x20] sm:$0xff] (%p34_p5)  ;;  %v277_v3 = vld [vmem:[%s3698_s10 + $0x30] sm:$0xff] (%p34_p5)  ;;  %272 = vst [vmem:[%s3706_s11] sm:$0xff] (%p34_p5), %v271_v0  ;;  %274 = vst [vmem:[%s3706_s11 + $0x8] sm:$0xff] (%p34_p5), %v273_v1 }
  0x18   : > { %v279_v4 = vld [vmem:[%s3698_s10 + $0x40] sm:$0xff] (%p34_p5)  ;;  %v281_v5 = vld [vmem:[%s3698_s10 + $0x50] sm:$0xff] (%p34_p5)  ;;  %276 = vst [vmem:[%s3706_s11 + $0x10] sm:$0xff] (%p34_p5), %v275_v2  ;;  %278 = vst [vmem:[%s3706_s11 + $0x18] sm:$0xff] (%p34_p5), %v277_v3 }
  0x19   : > { %280 = vst [vmem:[%s3706_s11 + $0x20] sm:$0xff] (%p34_p5), %v279_v4  ;;  %282 = vst [vmem:[%s3706_s11 + $0x28] sm:$0xff] (%p34_p5), %v281_v5  ;;  %v283_v6 = vld [vmem:[%s3698_s10 + $0x60] sm:$0xff] (%p34_p5)  ;;  %v285_v7 = vld [vmem:[%s3698_s10 + $0x70] sm:$0xff] (%p34_p5) }
  0x1a   : > { %v287_v8 = vld [vmem:[%s3698_s10 + $0x80] sm:$0xff]  ;;  %284 = vst [vmem:[%s3706_s11 + $0x30] sm:$0xff] %v283_v6  ;;  %286 = vst [vmem:[%s3706_s11 + $0x38] sm:$0xff] %v285_v7  ;;  %v289_v9 = vld [vmem:[%s3698_s10 + $0x90] sm:$0xff] }
  0x1b   : > { %288 = vst [vmem:[%s3706_s11 + $0x40] sm:$0xff] %v287_v8  ;;  %v291_v10 = vld [vmem:[%s3698_s10 + $0xa0] sm:$0xff]  ;;  %v293_v11 = vld [vmem:[%s3698_s10 + $0xb0] sm:$0xff]  ;;  %290 = vst [vmem:[%s3706_s11 + $0x48] sm:$0xff] %v289_v9 }
  0x1c   : > { %292 = vst [vmem:[%s3706_s11 + $0x50] sm:$0xff] %v291_v10  ;;  %294 = vst [vmem:[%s3706_s11 + $0x58] sm:$0xff] %v293_v11  ;;  %v295_v12 = vld [vmem:[%s3698_s10 + $0xc0] sm:$0xff]  ;;  %v297_v13 = vld [vmem:[%s3698_s10 + $0xd0] sm:$0xff] }
  0x1d   : > { %v299_v14 = vld [vmem:[%s3698_s10 + $0xe0] sm:$0xff]  ;;  %296 = vst [vmem:[%s3706_s11 + $0x60] sm:$0xff] %v295_v12  ;;  %298 = vst [vmem:[%s3706_s11 + $0x68] sm:$0xff] %v297_v13  ;;  %v301_v15 = vld [vmem:[%s3698_s10 + $0xf0] sm:$0xff] }
  0x1e   : > { %300 = vst [vmem:[%s3706_s11 + $0x70] sm:$0xff] %v299_v14  ;;  %v303_v16 = vld [vmem:[%s3698_s10 + $0x100] sm:$0xff]  ;;  %v305_v17 = vld [vmem:[%s3698_s10 + $0x110] sm:$0xff]  ;;  %302 = vst [vmem:[%s3706_s11 + $0x78] sm:$0xff] %v301_v15 }
  0x1f   : > { %304 = vst [vmem:[%s3706_s11 + $0x80] sm:$0xff] %v303_v16  ;;  %306 = vst [vmem:[%s3706_s11 + $0x88] sm:$0xff] %v305_v17  ;;  %v307_v18 = vld [vmem:[%s3698_s10 + $0x120] sm:$0xff]  ;;  %v309_v19 = vld [vmem:[%s3698_s10 + $0x130] sm:$0xff] }
  0x20   : > { %v311_v20 = vld [vmem:[%s3698_s10 + $0x140] sm:$0xff]  ;;  %308 = vst [vmem:[%s3706_s11 + $0x90] sm:$0xff] %v307_v18  ;;  %310 = vst [vmem:[%s3706_s11 + $0x98] sm:$0xff] %v309_v19  ;;  %v313_v21 = vld [vmem:[%s3698_s10 + $0x150] sm:$0xff] }
  0x21   : > { %312 = vst [vmem:[%s3706_s11 + $0xa0] sm:$0xff] %v311_v20  ;;  %v315_v22 = vld [vmem:[%s3698_s10 + $0x160] sm:$0xff]  ;;  %v317_v23 = vld [vmem:[%s3698_s10 + $0x170] sm:$0xff]  ;;  %314 = vst [vmem:[%s3706_s11 + $0xa8] sm:$0xff] %v313_v21 }
  0x22   : > { %316 = vst [vmem:[%s3706_s11 + $0xb0] sm:$0xff] %v315_v22  ;;  %318 = vst [vmem:[%s3706_s11 + $0xb8] sm:$0xff] %v317_v23  ;;  %v319_v24 = vld [vmem:[%s3698_s10 + $0x180] sm:$0xff]  ;;  %v321_v25 = vld [vmem:[%s3698_s10 + $0x190] sm:$0xff] }
  0x23   : > { %v323_v26 = vld [vmem:[%s3698_s10 + $0x1a0] sm:$0xff]  ;;  %320 = vst [vmem:[%s3706_s11 + $0xc0] sm:$0xff] %v319_v24  ;;  %322 = vst [vmem:[%s3706_s11 + $0xc8] sm:$0xff] %v321_v25  ;;  %v325_v27 = vld [vmem:[%s3698_s10 + $0x1b0] sm:$0xff] }
  0x24   : > { %324 = vst [vmem:[%s3706_s11 + $0xd0] sm:$0xff] %v323_v26  ;;  %326 = vst [vmem:[%s3706_s11 + $0xd8] sm:$0xff] %v325_v27 }
  0x25 PF: > { %p2617_p10 = scmp.ge.s32.totalorder %s3601_s21, 1  ;;  %p331_p11 = scmp.lt.s32.totalorder %s3601_s21, 3 }
  0x27   : > { %p332_p12 = pnand %p2617_p10, %p331_p11 }
  0x28   : > { %s3761_s12 = sand.u32 (!%p332_p12), 1, %s3593_s19   ;;  %v3479_v28 = vld [vmem:[%s4720_s1] sm:$0xff] (!%p332_p12)   ;;  %v3603_v29 = vmov (!%p332_p12), 0   ;;  %v3480_v30 = vld [vmem:[%s4720_s1 + $0x8] sm:$0xff] (!%p332_p12)   ;;  %v3481_v38 = vld [vmem:[%s4720_s1 + $0x10] sm:$0xff] (!%p332_p12)   ;;  %s3604_s30 = smov (!%p332_p12), 28  }
  0x29   : > { %335 = sbr.rel (%p332_p12) target bundleno = 1622 (0x656), region = 74  ;;  %1025 = vmatprep.subr.bf16.mxu0 (!%p332_p12), %v3603_v29  ;;  %s3605_s6 = smov (!%p332_p12), 84   ;;  %v3482_v41 = vld [vmem:[%s4720_s1 + $0x18] sm:$0xff] (!%p332_p12)   ;;  %v3483_v44 = vld [vmem:[%s4720_s1 + $0x20] sm:$0xff] (!%p332_p12)   ;;  %v3484_v48 = vld [vmem:[%s4720_s1 + $0x28] sm:$0xff] (!%p332_p12)   ;;  %vm1021_vm0 = vcmask (!%p332_p12), 1045504  }
  0x2a   : > { %s3004_s15 = smul.u32 (!%p332_p12), 224, %s3761_s12  ;;  %1026 = vmatpush1.bf16.msra.mxu0 (!%p332_p12), %v3479_v28  ;;  %s3606_s9 = smov (!%p332_p12), 56   ;;  %v3487_v50 = vld [vmem:[%s4720_s1 + $0x40] sm:$0x3f] (!%p332_p12)   ;;  %v3485_v51 = vld [vmem:[%s4720_s1 + $0x30] sm:$0xff] (!%p332_p12)   ;;  %v3486_v54 = vld [vmem:[%s4720_s1 + $0x38] sm:$0xff] (!%p332_p12)  }
  0x2b   : > { %1027 = vmatprep.subr.bf16.mxu0 (!%p332_p12), %v3603_v29  ;;  %s3607_s10 = smov (!%p332_p12), 112   ;;  %v1023_v55 = vsel (!%p332_p12), %vm1021_vm0, %v3487_v50, 0  ;;  %vm753_vm1 = vcmask (!%p332_p12), 228352   ;;  %vm784_vm2 = vcmask (!%p332_p12), 457728   ;;  %vm815_vm3 = vcmask (!%p332_p12), 687104   ;;  %s3609_s11 = smov (!%p332_p12), 72  }
  0x2c   : > { %s3772_s23 = scalar_lea.vmem (!%p332_p12), [#allocation2], %s3004_s15  ;;  %vm846_vm4 = vcmask (!%p332_p12), 916480   ;;  %vm978_vm5 = vcmask (!%p332_p12), 97280   ;;  %s3610_s13 = smov (!%p332_p12), 40   ;;  %vm1695_vm6 = vcmask (!%p332_p12), 1043456   ;;  %vm1480_vm7 = vcmask (!%p332_p12), 326656  }
  0x2d   : > { %v3775_v31 = vld [vmem:[%s3772_s23] sm:$0xff] (!%p332_p12)  ;;  %v3778_v32 = vld [vmem:[%s3772_s23 + $0x8] sm:$0xff] (!%p332_p12)  ;;  %v3781_v33 = vld [vmem:[%s3772_s23 + $0x10] sm:$0xff] (!%p332_p12)  ;;  %s3611_s14 = smov (!%p332_p12), 96   ;;  %vm1495_vm8 = vcmask (!%p332_p12), 785408   ;;  %vm1673_vm9 = vcmask (!%p332_p12), 195584  }
  0x2e   : > { %v3054_v34 = vpack.i.bf16 (!%p332_p12), %v3778_v32, %v3775_v31  ;;  %v3786_v35 = vld [vmem:[%s3772_s23 + $0x18] sm:$0xff] (!%p332_p12)  ;;  %v3789_v36 = vld [vmem:[%s3772_s23 + $0x20] sm:$0xff] (!%p332_p12)  ;;  %1028 = vmatpush1.bf16.msra.mxu0 (!%p332_p12), %v3480_v30  ;;  %v3059_v39 = vpack.i.bf16 (!%p332_p12), %v3781_v33, %v3778_v32  ;;  %v3809_v42 = vld [vmem:[%s3772_s23 + $0x28] sm:$0xff] (!%p332_p12)  ;;  %v3608_v30 = vmov (!%p332_p12), 0.0   ;;  %vm3612_vm10 = vmmov (!%p332_p12), 0   ;;  %s2535_s7 = scalar_lea.sflag (!%p332_p12), [#allocation4], %s3761_s12 }
  0x2f   : > { %v3064_v37 = vpack.i.bf16 (!%p332_p12), %v3786_v35, %v3781_v33  ;;  %v3069_v40 = vpack.i.bf16 (!%p332_p12), %v3789_v36, %v3786_v35  ;;  %1029 = vmatprep.subr.bf16.mxu0 (!%p332_p12), %v3603_v29  ;;  %v3812_v43 = vld [vmem:[%s3772_s23 + $0x30] sm:$0xff] (!%p332_p12)  ;;  %v3084_v45 = vpack.i.bf16 (!%p332_p12), %v3809_v42, %v3789_v36  ;;  %v3826_v47 = vld [vmem:[%s3772_s23 + $0x38] sm:$0xff] (!%p332_p12)  ;;  %v3833_v49 = vld [vmem:[%s3772_s23 + $0x40] sm:$0xff] (!%p332_p12)  ;;  %vm2488_vm11 = vcmask (!%p332_p12), 261120  }
  0x30   : > { %3055 = vrot.lane.b32.xlu0 %v3054_v34, %s3604_s30  ;;  %v3089_v46 = vpack.i.bf16 %v3812_v43, %v3809_v42  ;;  %v3104_v52 = vpack.i.bf16 %v3826_v47, %v3812_v43  ;;  %v3109_v53 = vpack.i.bf16 %v3833_v49, %v3826_v47  ;;  %v3854_v56 = vld [vmem:[%s3772_s23 + $0x48] sm:$0xff]  ;;  %v3858_v57 = vld [vmem:[%s3772_s23 + $0x50] sm:$0xff]  ;;  %v3870_v60 = vld [vmem:[%s3772_s23 + $0x58] sm:$0xff]  ;;  %vm2532_vm12 = vcmask 80896  }
  0x31   : > { %3065 = vrot.lane.b32.xlu1 %v3064_v37, %s3605_s6  ;;  %v3124_v58 = vpack.i.bf16 %v3854_v56, %v3833_v49  ;;  %v3129_v59 = vpack.i.bf16 %v3858_v57, %v3854_v56  ;;  %v3874_v61 = vld [vmem:[%s3772_s23 + $0x60] sm:$0xff]  ;;  %v3144_v62 = vpack.i.bf16 %v3870_v60, %v3858_v57  ;;  %v3884_v0 = vld [vmem:[%s3772_s23 + $0x68] sm:$0xff]  ;;  %v3888_v1 = vld [vmem:[%s3772_s23 + $0x70] sm:$0xff] }
  0x32   : > { %1030 = vmatpush1.bf16.msra.mxu0 %v3481_v38  ;;  %v3149_v63 = vpack.i.bf16 %v3874_v61, %v3870_v60  ;;  %v3164_v2 = vpack.i.bf16 %v3884_v0, %v3874_v61  ;;  %v3169_v3 = vpack.i.bf16 %v3888_v1, %v3884_v0  ;;  %v3900_v4 = vld [vmem:[%s3772_s23 + $0x78] sm:$0xff]  ;;  %v3903_v5 = vld [vmem:[%s3772_s23 + $0x80] sm:$0xff]  ;;  %v3914_v8 = vld [vmem:[%s3772_s23 + $0x88] sm:$0xff] }
  0x33   : > { %1031 = vmatprep.subr.bf16.mxu0 %v3603_v29  ;;  %v3184_v6 = vpack.i.bf16 %v3900_v4, %v3888_v1  ;;  %v3189_v7 = vpack.i.bf16 %v3903_v5, %v3900_v4  ;;  %v3917_v9 = vld [vmem:[%s3772_s23 + $0x90] sm:$0xff]  ;;  %v3204_v10 = vpack.i.bf16 %v3914_v8, %v3903_v5  ;;  %v3928_v12 = vld [vmem:[%s3772_s23 + $0x98] sm:$0xff]  ;;  %v3931_v13 = vld [vmem:[%s3772_s23 + $0xa0] sm:$0xff] }
  0x34   : > { %3060 = vrot.lane.b32.xlu0 %v3059_v39, %s3606_s9  ;;  %v3209_v11 = vpack.i.bf16 %v3917_v9, %v3914_v8  ;;  %v3224_v14 = vpack.i.bf16 %v3928_v12, %v3917_v9  ;;  %v3229_v15 = vpack.i.bf16 %v3931_v13, %v3928_v12  ;;  %v3942_v16 = vld [vmem:[%s3772_s23 + $0xa8] sm:$0xff]  ;;  %v3945_v17 = vld [vmem:[%s3772_s23 + $0xb0] sm:$0xff]  ;;  %v3956_v20 = vld [vmem:[%s3772_s23 + $0xb8] sm:$0xff] }
  0x35   : > { %3070 = vrot.lane.b32.xlu1 %v3069_v40, %s3607_s10  ;;  %v3244_v18 = vpack.i.bf16 %v3942_v16, %v3931_v13  ;;  %v3249_v19 = vpack.i.bf16 %v3945_v17, %v3942_v16  ;;  %v3959_v21 = vld [vmem:[%s3772_s23 + $0xc0] sm:$0xff]  ;;  %v3264_v22 = vpack.i.bf16 %v3956_v20, %v3945_v17  ;;  %v391_v24 = vld [vmem:[%s3772_s23 + $0xc8] sm:$0xff]  ;;  %v392_v25 = vld [vmem:[%s3772_s23 + $0xd0] sm:$0xff] }
  0x36   : > { %1032 = vmatpush1.bf16.msra.mxu0 %v3482_v41  ;;  %v3269_v23 = vpack.i.bf16 %v3959_v21, %v3956_v20  ;;  %v3284_v26 = vpack.i.bf16 %v391_v24, %v3959_v21  ;;  %v3289_v27 = vpack.i.bf16 %v392_v25, %v391_v24  ;;  %v393_v28 = vld [vmem:[%s3772_s23 + $0xd8] sm:$0xff] }
  0x37   : > { %1033 = vmatprep.subr.bf16.mxu0 %v3603_v29  ;;  %v3982_v34 = vpack.i.bf16 %v3608_v30, %v393_v28 }
  0x38   : > { %3075 = vrot.lane.b32.xlu0 %v3064_v37, %s3604_s30 }
  0x39   : > { %3080 = vrot.lane.b32.xlu1 %v3069_v40, %s3606_s9 }
  0x3a   : > { %1034 = vmatpush1.bf16.msra.mxu0 %v3483_v44 }
  0x3b   : > { %1035 = vmatprep.subr.bf16.mxu0 %v3603_v29 }
  0x3c   : > { %3085 = vrot.lane.b32.xlu0 %v3084_v45, %s3605_s6 }
  0x3d   : > { %3090 = vrot.lane.b32.xlu1 %v3089_v46, %s3607_s10 }
  0x3e   : > { %1036 = vmatpush1.bf16.msra.mxu0 %v3484_v48 }
  0x3f   : > { %1037 = vmatprep.subr.bf16.mxu0 %v3603_v29 }
  0x40   : > { %3095 = vrot.lane.b32.xlu0 %v3084_v45, %s3604_s30 }
  0x41   : > { %3100 = vrot.lane.b32.xlu1 %v3089_v46, %s3606_s9 }
  0x42   : > { %1038 = vmatpush1.bf16.msra.mxu0 %v3485_v51 }
  0x43   : > { %1039 = vmatprep.subr.bf16.mxu0 %v3603_v29 }
  0x44   : > { %3105 = vrot.lane.b32.xlu0 %v3104_v52, %s3605_s6 }
  0x45   : > { %3110 = vrot.lane.b32.xlu1 %v3109_v53, %s3607_s10 }
  0x46   : > { %1040 = vmatpush1.bf16.msra.mxu0 %v3486_v54 }
  0x47   : > { %1041 = vmatprep.subr.bf16.mxu0 %v3603_v29  ;;  %v3978_v29 = vpack.i.bf16 %v393_v28, %v392_v25 }
  0x48   : > { %3115 = vrot.lane.b32.xlu0 %v3104_v52, %s3604_s30 }
  0x49   : > { %3120 = vrot.lane.b32.xlu1 %v3109_v53, %s3606_s9 }
  0x4a   : > { %1042 = vmatpush1.bf16.msra.mxu0 %v1023_v55 }
  0x4c   : > { %3125 = vrot.lane.b32.xlu0 %v3124_v58, %s3605_s6 }
  0x4d   : > { %3130 = vrot.lane.b32.xlu1 %v3129_v59, %s3607_s10 }
  0x50   : > { %3135 = vrot.lane.b32.xlu0 %v3124_v58, %s3604_s30 }
  0x51   : > { %3140 = vrot.lane.b32.xlu1 %v3129_v59, %s3606_s9 }
  0x54   : > { %3145 = vrot.lane.b32.xlu0 %v3144_v62, %s3605_s6 }
  0x55   : > { %3150 = vrot.lane.b32.xlu1 %v3149_v63, %s3607_s10 }
  0x58   : > { %3155 = vrot.lane.b32.xlu0 %v3144_v62, %s3604_s30 }
  0x59   : > { %3160 = vrot.lane.b32.xlu1 %v3149_v63, %s3606_s9 }
  0x5c   : > { %3165 = vrot.lane.b32.xlu0 %v3164_v2, %s3605_s6 }
  0x5d   : > { %3170 = vrot.lane.b32.xlu1 %v3169_v3, %s3607_s10 }
  0x60   : > { %3175 = vrot.lane.b32.xlu0 %v3164_v2, %s3604_s30 }
  0x61   : > { %3180 = vrot.lane.b32.xlu1 %v3169_v3, %s3606_s9 }
  0x64   : > { %3185 = vrot.lane.b32.xlu0 %v3184_v6, %s3605_s6 }
  0x65   : > { %3190 = vrot.lane.b32.xlu1 %v3189_v7, %s3607_s10 }
  0x68   : > { %3195 = vrot.lane.b32.xlu0 %v3184_v6, %s3604_s30 }
  0x69   : > { %3200 = vrot.lane.b32.xlu1 %v3189_v7, %s3606_s9 }
  0x6c   : > { %3205 = vrot.lane.b32.xlu0 %v3204_v10, %s3605_s6 }
  0x6d   : > { %3210 = vrot.lane.b32.xlu1 %v3209_v11, %s3607_s10 }
  0x70   : > { %3215 = vrot.lane.b32.xlu0 %v3204_v10, %s3604_s30 }
  0x71   : > { %3220 = vrot.lane.b32.xlu1 %v3209_v11, %s3606_s9 }
  0x74   : > { %3225 = vrot.lane.b32.xlu0 %v3224_v14, %s3605_s6 }
  0x75   : > { %3230 = vrot.lane.b32.xlu1 %v3229_v15, %s3607_s10 }
  0x78   : > { %3235 = vrot.lane.b32.xlu0 %v3224_v14, %s3604_s30 }
  0x79   : > { %3240 = vrot.lane.b32.xlu1 %v3229_v15, %s3606_s9 }
  0x7c   : > { %3245 = vrot.lane.b32.xlu0 %v3244_v18, %s3605_s6 }
  0x7d   : > { %3250 = vrot.lane.b32.xlu1 %v3249_v19, %s3607_s10 }
  0x80   : > { %3255 = vrot.lane.b32.xlu0 %v3244_v18, %s3604_s30 }
  0x81   : > { %3260 = vrot.lane.b32.xlu1 %v3249_v19, %s3606_s9 }
  0x84   : > { %3265 = vrot.lane.b32.xlu0 %v3264_v22, %s3605_s6 }
  0x85   : > { %3270 = vrot.lane.b32.xlu1 %v3269_v23, %s3607_s10 }
  0x88   : > { %3275 = vrot.lane.b32.xlu0 %v3264_v22, %s3604_s30 }
  0x89   : > { %3280 = vrot.lane.b32.xlu1 %v3269_v23, %s3606_s9 }
  0x8c   : > { %3285 = vrot.lane.b32.xlu0 %v3284_v26, %s3605_s6 }
  0x8d   : > { %3290 = vrot.lane.b32.xlu1 %v3289_v27, %s3607_s10 }
  0x90   : > { %3295 = vrot.lane.b32.xlu0 %v3284_v26, %s3604_s30 }
  0x91   : > { %3300 = vrot.lane.b32.xlu1 %v3289_v27, %s3606_s9 }
  0x94   : > { %3305 = vrot.lane.b32.xlu0 %v3978_v29, %s3605_s6 }
  0x95   : > { %3310 = vrot.lane.b32.xlu1 %v3982_v34, %s3607_s10 }
  0xa2   : > { %v3056_v37 = vpop.permute.xlu0 %3055 }
  0xa3   : > { %v3066_v38 = vpop.permute.xlu1 %3065  ;;  %v3058_v39 = vunpack.i.h.bf16 %v3056_v37  ;;  %v3057_v40 = vunpack.i.l.bf16 %v3056_v37 }
  0xa4   : > { %v3068_v44 = vunpack.i.h.bf16 %v3066_v38  ;;  %v3067_v45 = vunpack.i.l.bf16 %v3066_v38 }
  0xa5   : > { %v755_v51 = vsel %vm753_vm1, %v3775_v31, %v3058_v39  ;;  %v754_v52 = vsel %vm753_vm1, 0.0, %v3057_v40 }
  0xa6   : > { %v3061_v41 = vpop.permute.xlu0 %3060 }
  0xa7   : > { %v3063_v46 = vunpack.i.h.bf16 %v3061_v41  ;;  %v3062_v48 = vunpack.i.l.bf16 %v3061_v41  ;;  %v3071_v50 = vpop.permute.xlu1 %3070 }
  0xa8   : > { %v3073_v53 = vunpack.i.h.bf16 %v3071_v50  ;;  %v3072_v54 = vunpack.i.l.bf16 %v3071_v50 }
  0xa9   : > { %v785_v55 = vsel %vm784_vm2, %v754_v52, %v3062_v48  ;;  %v786_v58 = vsel %vm784_vm2, %v755_v51, %v3063_v46 }
  0xaa   : > { %v3076_v59 = vpop.permute.xlu0 %3075  ;;  %v878_v62 = vpack.c.bf16 %v3073_v53, %v3072_v54  ;;  %v816_v63 = vsel %vm815_vm3, %v785_v55, %v3067_v45  ;;  %v817_v2 = vsel %vm815_vm3, %v786_v58, %v3068_v44 }
  0xab   : > { %v3078_v3 = vunpack.i.h.bf16 %v3076_v59  ;;  %v3077_v6 = vunpack.i.l.bf16 %v3076_v59  ;;  %v3081_v7 = vpop.permute.xlu1 %3080  ;;  %v847_v31 = vsel %vm846_vm4, %v816_v63, %v3072_v54  ;;  %v848_v10 = vsel %vm846_vm4, %v817_v2, %v3073_v53 }
  0xac   : > { %v3083_v11 = vunpack.i.h.bf16 %v3081_v7  ;;  %v3082_v14 = vunpack.i.l.bf16 %v3081_v7  ;;  %2628 = vmatprep.mubr.msk.bf16.mxu0 %vm978_vm5, %v878_v62  ;;  %v877_v15 = vpack.c.bf16 %v848_v10, %v847_v31 }
  0xad   : > { %v757_v18 = vsel %vm753_vm1, %v3781_v33, %v3078_v3  ;;  %v756_v19 = vsel %vm753_vm1, %v3778_v32, %v3077_v6 }
  0xae   : > { %v787_v22 = vsel %vm784_vm2, %v756_v19, %v3082_v14  ;;  %v788_v23 = vsel %vm784_vm2, %v757_v18, %v3083_v11  ;;  %v3086_v24 = vpop.permute.xlu0 %3085  ;;  %1058 = vmatmul.mubr.bf16.vlgmr.msra.gmra.mrb[0].mxu0 %v877_v15 }
  0xaf   : > { %v3088_v25 = vunpack.i.h.bf16 %v3086_v24  ;;  %v3087_v26 = vunpack.i.l.bf16 %v3086_v24  ;;  %v3091_v27 = vpop.permute.xlu1 %3090 }
  0xb0   : > { %v3093_v28 = vunpack.i.h.bf16 %v3091_v27  ;;  %v3092_v37 = vunpack.i.l.bf16 %v3091_v27 }
  0xb1   : > { %v818_v38 = vsel %vm815_vm3, %v787_v22, %v3087_v26  ;;  %v819_v39 = vsel %vm815_vm3, %v788_v23, %v3088_v25 }
  0xb2   : > { %v880_v40 = vpack.c.bf16 %v3093_v28, %v3092_v37  ;;  %v3096_v33 = vpop.permute.xlu0 %3095  ;;  %v849_v41 = vsel %vm846_vm4, %v818_v38, %v3092_v37  ;;  %v850_v32 = vsel %vm846_vm4, %v819_v39, %v3093_v28 }
  0xb3   : > { %v3098_v44 = vunpack.i.h.bf16 %v3096_v33  ;;  %v3097_v45 = vunpack.i.l.bf16 %v3096_v33  ;;  %v3101_v46 = vpop.permute.xlu1 %3100  ;;  %v879_v48 = vpack.c.bf16 %v850_v32, %v849_v41 }
  0xb4   : > { %v3103_v50 = vunpack.i.h.bf16 %v3101_v46  ;;  %v3102_v51 = vunpack.i.l.bf16 %v3101_v46  ;;  %2629 = vmatprep.mubr.msk.bf16.mxu0 %vm978_vm5, %v880_v40 }
  0xb5   : > { %v759_v52 = vsel %vm753_vm1, %v3789_v36, %v3098_v44  ;;  %v758_v53 = vsel %vm753_vm1, %v3786_v35, %v3097_v45 }
  0xb6   : > { %v789_v54 = vsel %vm784_vm2, %v758_v53, %v3102_v51  ;;  %v790_v55 = vsel %vm784_vm2, %v759_v52, %v3103_v50  ;;  %v3106_v58 = vpop.permute.xlu0 %3105  ;;  %1066 = vmatmul.mubr.bf16.gmra.mrb[4].mxu0 %v879_v48 }
  0xb7   : > { %v3108_v59 = vunpack.i.h.bf16 %v3106_v58  ;;  %v3107_v62 = vunpack.i.l.bf16 %v3106_v58  ;;  %v3111_v63 = vpop.permute.xlu1 %3110 }
  0xb8   : > { %v3113_v2 = vunpack.i.h.bf16 %v3111_v63  ;;  %v3112_v3 = vunpack.i.l.bf16 %v3111_v63 }
  0xb9   : > { %v820_v6 = vsel %vm815_vm3, %v789_v54, %v3107_v62  ;;  %v821_v7 = vsel %vm815_vm3, %v790_v55, %v3108_v59 }
  0xba   : > { %v882_v31 = vpack.c.bf16 %v3113_v2, %v3112_v3  ;;  %v3116_v36 = vpop.permute.xlu0 %3115  ;;  %v851_v10 = vsel %vm846_vm4, %v820_v6, %v3112_v3  ;;  %v852_v35 = vsel %vm846_vm4, %v821_v7, %v3113_v2 }
  0xbb   : > { %v3118_v11 = vunpack.i.h.bf16 %v3116_v36  ;;  %v3117_v14 = vunpack.i.l.bf16 %v3116_v36  ;;  %v3121_v15 = vpop.permute.xlu1 %3120  ;;  %v881_v18 = vpack.c.bf16 %v852_v35, %v851_v10 }
  0xbc   : > { %v3123_v19 = vunpack.i.h.bf16 %v3121_v15  ;;  %v3122_v22 = vunpack.i.l.bf16 %v3121_v15  ;;  %2630 = vmatprep.mubr.msk.bf16.mxu0 %vm978_vm5, %v882_v31 }
  0xbd   : > { %v761_v23 = vsel %vm753_vm1, %v3812_v43, %v3118_v11  ;;  %v760_v24 = vsel %vm753_vm1, %v3809_v42, %v3117_v14 }
  0xbe   : > { %v791_v25 = vsel %vm784_vm2, %v760_v24, %v3122_v22  ;;  %v792_v26 = vsel %vm784_vm2, %v761_v23, %v3123_v19  ;;  %v3126_v27 = vpop.permute.xlu0 %3125  ;;  %1074 = vmatmul.mubr.bf16.gmra.mrb[8].mxu0 %v881_v18 }
  0xbf   : > { %v3128_v28 = vunpack.i.h.bf16 %v3126_v27  ;;  %v3127_v37 = vunpack.i.l.bf16 %v3126_v27  ;;  %v3131_v38 = vpop.permute.xlu1 %3130 }
  0xc0   : > { %v3133_v39 = vunpack.i.h.bf16 %v3131_v38  ;;  %v3132_v40 = vunpack.i.l.bf16 %v3131_v38 }
  0xc1   : > { %v822_v33 = vsel %vm815_vm3, %v791_v25, %v3127_v37  ;;  %v823_v41 = vsel %vm815_vm3, %v792_v26, %v3128_v28 }
  0xc2   : > { %v884_v32 = vpack.c.bf16 %v3133_v39, %v3132_v40  ;;  %v3136_v43 = vpop.permute.xlu0 %3135  ;;  %v853_v44 = vsel %vm846_vm4, %v822_v33, %v3132_v40  ;;  %v854_v42 = vsel %vm846_vm4, %v823_v41, %v3133_v39 }
  0xc3   : > { %v3138_v45 = vunpack.i.h.bf16 %v3136_v43  ;;  %v3137_v46 = vunpack.i.l.bf16 %v3136_v43  ;;  %v3141_v48 = vpop.permute.xlu1 %3140  ;;  %v883_v50 = vpack.c.bf16 %v854_v42, %v853_v44 }
  0xc4   : > { %v3143_v51 = vunpack.i.h.bf16 %v3141_v48  ;;  %v3142_v52 = vunpack.i.l.bf16 %v3141_v48  ;;  %2631 = vmatprep.mubr.msk.bf16.mxu0 %vm978_vm5, %v884_v32 }
  0xc5   : > { %v763_v53 = vsel %vm753_vm1, %v3833_v49, %v3138_v45  ;;  %v762_v54 = vsel %vm753_vm1, %v3826_v47, %v3137_v46 }
  0xc6   : > { %v793_v55 = vsel %vm784_vm2, %v762_v54, %v3142_v52  ;;  %v794_v58 = vsel %vm784_vm2, %v763_v53, %v3143_v51  ;;  %v3146_v59 = vpop.permute.xlu0 %3145  ;;  %1082 = vmatmul.mubr.bf16.gmra.mrb[12].mxu0 %v883_v50 }
  0xc7   : > { %v3148_v62 = vunpack.i.h.bf16 %v3146_v59  ;;  %v3147_v63 = vunpack.i.l.bf16 %v3146_v59  ;;  %v3151_v2 = vpop.permute.xlu1 %3150 }
  0xc8   : > { %v3153_v3 = vunpack.i.h.bf16 %v3151_v2  ;;  %v3152_v6 = vunpack.i.l.bf16 %v3151_v2 }
  0xc9   : > { %v824_v7 = vsel %vm815_vm3, %v793_v55, %v3147_v63  ;;  %v825_v31 = vsel %vm815_vm3, %v794_v58, %v3148_v62 }
  0xca   : > { %v886_v36 = vpack.c.bf16 %v3153_v3, %v3152_v6  ;;  %v3156_v49 = vpop.permute.xlu0 %3155  ;;  %v855_v10 = vsel %vm846_vm4, %v824_v7, %v3152_v6  ;;  %v856_v47 = vsel %vm846_vm4, %v825_v31, %v3153_v3 }
  0xcb   : > { %v3158_v35 = vunpack.i.h.bf16 %v3156_v49  ;;  %v3157_v11 = vunpack.i.l.bf16 %v3156_v49  ;;  %v3161_v14 = vpop.permute.xlu1 %3160  ;;  %v885_v15 = vpack.c.bf16 %v856_v47, %v855_v10 }
  0xcc   : > { %v3163_v18 = vunpack.i.h.bf16 %v3161_v14  ;;  %v3162_v19 = vunpack.i.l.bf16 %v3161_v14  ;;  %2632 = vmatprep.mubr.msk.bf16.mxu0 %vm978_vm5, %v886_v36 }
  0xcd   : > { %v765_v22 = vsel %vm753_vm1, %v3858_v57, %v3158_v35  ;;  %v764_v23 = vsel %vm753_vm1, %v3854_v56, %v3157_v11 }
  0xce   : > { %v795_v24 = vsel %vm784_vm2, %v764_v23, %v3162_v19  ;;  %v796_v25 = vsel %vm784_vm2, %v765_v22, %v3163_v18  ;;  %v3166_v26 = vpop.permute.xlu0 %3165  ;;  %1090 = vmatmul.mubr.bf16.gmra.mrb[16].mxu0 %v885_v15 }
  0xcf   : > { %v3168_v27 = vunpack.i.h.bf16 %v3166_v26  ;;  %v3167_v28 = vunpack.i.l.bf16 %v3166_v26  ;;  %v3171_v37 = vpop.permute.xlu1 %3170 }
  0xd0   : > { %v3173_v38 = vunpack.i.h.bf16 %v3171_v37  ;;  %v3172_v39 = vunpack.i.l.bf16 %v3171_v37 }
  0xd1   : > { %v826_v40 = vsel %vm815_vm3, %v795_v24, %v3167_v28  ;;  %v827_v33 = vsel %vm815_vm3, %v796_v25, %v3168_v27 }
  0xd2   : > { %v888_v41 = vpack.c.bf16 %v3173_v38, %v3172_v39  ;;  %v3176_v57 = vpop.permute.xlu0 %3175  ;;  %v857_v32 = vsel %vm846_vm4, %v826_v40, %v3172_v39  ;;  %v858_v56 = vsel %vm846_vm4, %v827_v33, %v3173_v38 }
  0xd3   : > { %v3178_v43 = vunpack.i.h.bf16 %v3176_v57  ;;  %v3177_v44 = vunpack.i.l.bf16 %v3176_v57  ;;  %v3181_v42 = vpop.permute.xlu1 %3180  ;;  %v887_v45 = vpack.c.bf16 %v858_v56, %v857_v32 }
  0xd4   : > { %v3183_v46 = vunpack.i.h.bf16 %v3181_v42  ;;  %v3182_v48 = vunpack.i.l.bf16 %v3181_v42  ;;  %2633 = vmatprep.mubr.msk.bf16.mxu0 %vm978_vm5, %v888_v41 }
  0xd5   : > { %v767_v50 = vsel %vm753_vm1, %v3874_v61, %v3178_v43  ;;  %v766_v51 = vsel %vm753_vm1, %v3870_v60, %v3177_v44 }
  0xd6   : > { %v797_v52 = vsel %vm784_vm2, %v766_v51, %v3182_v48  ;;  %v798_v53 = vsel %vm784_vm2, %v767_v50, %v3183_v46  ;;  %v3186_v54 = vpop.permute.xlu0 %3185  ;;  %1098 = vmatmul.mubr.bf16.gmra.mrb[20].mxu0 %v887_v45 }
  0xd7   : > { %v3188_v55 = vunpack.i.h.bf16 %v3186_v54  ;;  %v3187_v58 = vunpack.i.l.bf16 %v3186_v54  ;;  %v3191_v59 = vpop.permute.xlu1 %3190 }
  0xd8   : > { %v3193_v62 = vunpack.i.h.bf16 %v3191_v59  ;;  %v3192_v63 = vunpack.i.l.bf16 %v3191_v59 }
  0xd9   : > { %v828_v2 = vsel %vm815_vm3, %v797_v52, %v3187_v58  ;;  %v829_v3 = vsel %vm815_vm3, %v798_v53, %v3188_v55 }
  0xda   : > { %v890_v6 = vpack.c.bf16 %v3193_v62, %v3192_v63  ;;  %v3196_v61 = vpop.permute.xlu0 %3195  ;;  %v859_v7 = vsel %vm846_vm4, %v828_v2, %v3192_v63  ;;  %v860_v60 = vsel %vm846_vm4, %v829_v3, %v3193_v62 }
  0xdb   : > { %v3198_v31 = vunpack.i.h.bf16 %v3196_v61  ;;  %v3197_v36 = vunpack.i.l.bf16 %v3196_v61  ;;  %v3201_v49 = vpop.permute.xlu1 %3200  ;;  %v889_v10 = vpack.c.bf16 %v860_v60, %v859_v7 }
  0xdc   : > { %v3203_v47 = vunpack.i.h.bf16 %v3201_v49  ;;  %v3202_v35 = vunpack.i.l.bf16 %v3201_v49  ;;  %2634 = vmatprep.mubr.msk.bf16.mxu0 %vm978_vm5, %v890_v6 }
  0xdd   : > { %v769_v11 = vsel %vm753_vm1, %v3888_v1, %v3198_v31  ;;  %v768_v14 = vsel %vm753_vm1, %v3884_v0, %v3197_v36 }
  0xde   : > { %v799_v15 = vsel %vm784_vm2, %v768_v14, %v3202_v35  ;;  %v800_v18 = vsel %vm784_vm2, %v769_v11, %v3203_v47  ;;  %1106 = vmatmul.mubr.bf16.gmra.mrb[24].mxu0 %v889_v10  ;;  %v3206_v19 = vpop.permute.xlu0 %3205 }
  0xdf   : > { %v3208_v22 = vunpack.i.h.bf16 %v3206_v19  ;;  %v3207_v23 = vunpack.i.l.bf16 %v3206_v19  ;;  %v3211_v24 = vpop.permute.xlu1 %3210 }
  0xe0   : > { %v3213_v25 = vunpack.i.h.bf16 %v3211_v24  ;;  %v3212_v26 = vunpack.i.l.bf16 %v3211_v24 }
  0xe1   : > { %v830_v27 = vsel %vm815_vm3, %v799_v15, %v3207_v23  ;;  %v831_v28 = vsel %vm815_vm3, %v800_v18, %v3208_v22 }
  0xe2   : > { %v892_v37 = vpack.c.bf16 %v3213_v25, %v3212_v26  ;;  %v3216_v1 = vpop.permute.xlu0 %3215  ;;  %v861_v38 = vsel %vm846_vm4, %v830_v27, %v3212_v26  ;;  %v862_v0 = vsel %vm846_vm4, %v831_v28, %v3213_v25 }
  0xe3   : > { %v3218_v39 = vunpack.i.h.bf16 %v3216_v1  ;;  %v3217_v40 = vunpack.i.l.bf16 %v3216_v1  ;;  %v3221_v33 = vpop.permute.xlu1 %3220  ;;  %v891_v41 = vpack.c.bf16 %v862_v0, %v861_v38 }
  0xe4   : > { %v3223_v57 = vunpack.i.h.bf16 %v3221_v33  ;;  %v3222_v32 = vunpack.i.l.bf16 %v3221_v33  ;;  %2635 = vmatprep.mubr.msk.bf16.mxu0 %vm978_vm5, %v892_v37 }
  0xe5   : > { %v771_v56 = vsel %vm753_vm1, %v3903_v5, %v3218_v39  ;;  %v770_v43 = vsel %vm753_vm1, %v3900_v4, %v3217_v40 }
  0xe6   : > { %v801_v44 = vsel %vm784_vm2, %v770_v43, %v3222_v32  ;;  %v802_v42 = vsel %vm784_vm2, %v771_v56, %v3223_v57  ;;  %1114 = vmatmul.mubr.bf16.gmra.mrb[28].mxu0 %v891_v41  ;;  %v3226_v45 = vpop.permute.xlu0 %3225 }
  0xe7   : > { %v3228_v46 = vunpack.i.h.bf16 %v3226_v45  ;;  %v3227_v48 = vunpack.i.l.bf16 %v3226_v45  ;;  %v3231_v50 = vpop.permute.xlu1 %3230 }
  0xe8   : > { %v3233_v51 = vunpack.i.h.bf16 %v3231_v50  ;;  %v3232_v52 = vunpack.i.l.bf16 %v3231_v50 }
  0xe9   : > { %v832_v53 = vsel %vm815_vm3, %v801_v44, %v3227_v48  ;;  %v833_v54 = vsel %vm815_vm3, %v802_v42, %v3228_v46 }
  0xea   : > { %v894_v55 = vpack.c.bf16 %v3233_v51, %v3232_v52  ;;  %v3236_v5 = vpop.permute.xlu0 %3235  ;;  %v863_v58 = vsel %vm846_vm4, %v832_v53, %v3232_v52  ;;  %v864_v4 = vsel %vm846_vm4, %v833_v54, %v3233_v51 }
  0xeb   : > { %v3238_v59 = vunpack.i.h.bf16 %v3236_v5  ;;  %v3237_v62 = vunpack.i.l.bf16 %v3236_v5  ;;  %v3241_v63 = vpop.permute.xlu1 %3240  ;;  %v893_v2 = vpack.c.bf16 %v864_v4, %v863_v58 }
  0xec   : > { %v3243_v3 = vunpack.i.h.bf16 %v3241_v63  ;;  %v3242_v6 = vunpack.i.l.bf16 %v3241_v63  ;;  %2636 = vmatprep.mubr.msk.bf16.mxu0 %vm978_vm5, %v894_v55 }
  0xed   : > { %v773_v61 = vsel %vm753_vm1, %v3917_v9, %v3238_v59  ;;  %v772_v7 = vsel %vm753_vm1, %v3914_v8, %v3237_v62 }
  0xee   : > { %v803_v60 = vsel %vm784_vm2, %v772_v7, %v3242_v6  ;;  %v804_v31 = vsel %vm784_vm2, %v773_v61, %v3243_v3  ;;  %1122 = vmatmul.mubr.bf16.gmra.mrb[32].mxu0 %v893_v2  ;;  %v3246_v36 = vpop.permute.xlu0 %3245 }
  0xef   : > { %v3248_v49 = vunpack.i.h.bf16 %v3246_v36  ;;  %v3247_v10 = vunpack.i.l.bf16 %v3246_v36  ;;  %v3251_v47 = vpop.permute.xlu1 %3250 }
  0xf0   : > { %v3253_v35 = vunpack.i.h.bf16 %v3251_v47  ;;  %v3252_v11 = vunpack.i.l.bf16 %v3251_v47 }
  0xf1   : > { %v834_v14 = vsel %vm815_vm3, %v803_v60, %v3247_v10  ;;  %v835_v15 = vsel %vm815_vm3, %v804_v31, %v3248_v49 }
  0xf2   : > { %v896_v18 = vpack.c.bf16 %v3253_v35, %v3252_v11  ;;  %v3256_v9 = vpop.permute.xlu0 %3255  ;;  %v865_v19 = vsel %vm846_vm4, %v834_v14, %v3252_v11  ;;  %v866_v8 = vsel %vm846_vm4, %v835_v15, %v3253_v35 }
  0xf3   : > { %v3258_v22 = vunpack.i.h.bf16 %v3256_v9  ;;  %v3257_v23 = vunpack.i.l.bf16 %v3256_v9  ;;  %v3261_v24 = vpop.permute.xlu1 %3260  ;;  %v895_v25 = vpack.c.bf16 %v866_v8, %v865_v19 }
  0xf4   : > { %v3263_v26 = vunpack.i.h.bf16 %v3261_v24  ;;  %v3262_v27 = vunpack.i.l.bf16 %v3261_v24  ;;  %2637 = vmatprep.mubr.msk.bf16.mxu0 %vm978_vm5, %v896_v18 }
  0xf5   : > { %v775_v28 = vsel %vm753_vm1, %v3931_v13, %v3258_v22  ;;  %v774_v37 = vsel %vm753_vm1, %v3928_v12, %v3257_v23 }
  0xf6   : > { %v805_v1 = vsel %vm784_vm2, %v774_v37, %v3262_v27  ;;  %v806_v38 = vsel %vm784_vm2, %v775_v28, %v3263_v26  ;;  %1130 = vmatmul.mubr.bf16.gmra.mrb[36].mxu0 %v895_v25  ;;  %v3266_v0 = vpop.permute.xlu0 %3265 }
  0xf7   : > { %v3268_v39 = vunpack.i.h.bf16 %v3266_v0  ;;  %v3267_v40 = vunpack.i.l.bf16 %v3266_v0  ;;  %v3271_v33 = vpop.permute.xlu1 %3270 }
  0xf8   : > { %v3273_v41 = vunpack.i.h.bf16 %v3271_v33  ;;  %v3272_v57 = vunpack.i.l.bf16 %v3271_v33 }
  0xf9   : > { %v836_v32 = vsel %vm815_vm3, %v805_v1, %v3267_v40  ;;  %v837_v56 = vsel %vm815_vm3, %v806_v38, %v3268_v39 }
  0xfa   : > { %v898_v43 = vpack.c.bf16 %v3273_v41, %v3272_v57  ;;  %v867_v13 = vsel %vm846_vm4, %v836_v32, %v3272_v57  ;;  %v868_v12 = vsel %vm846_vm4, %v837_v56, %v3273_v41  ;;  %v3276_v44 = vpop.permute.xlu0 %3275 }
  0xfb   : > { %v897_v42 = vpack.c.bf16 %v868_v12, %v867_v13  ;;  %v3278_v45 = vunpack.i.h.bf16 %v3276_v44  ;;  %v3277_v46 = vunpack.i.l.bf16 %v3276_v44  ;;  %v3281_v48 = vpop.permute.xlu1 %3280 }
  0xfc   : > { %2638 = vmatprep.mubr.msk.bf16.mxu0 %vm978_vm5, %v898_v43  ;;  %v3283_v50 = vunpack.i.h.bf16 %v3281_v48  ;;  %v3282_v51 = vunpack.i.l.bf16 %v3281_v48 }
  0xfd   : > { %v777_v52 = vsel %vm753_vm1, %v3945_v17, %v3278_v45  ;;  %v776_v53 = vsel %vm753_vm1, %v3942_v16, %v3277_v46 }
  0xfe   : > { %1138 = vmatmul.mubr.bf16.gmra.mrb[40].mxu0 %v897_v42  ;;  %v807_v54 = vsel %vm784_vm2, %v776_v53, %v3282_v51  ;;  %v808_v55 = vsel %vm784_vm2, %v777_v52, %v3283_v50  ;;  %v3286_v5 = vpop.permute.xlu0 %3285 }
  0xff   : > { %v3288_v58 = vunpack.i.h.bf16 %v3286_v5  ;;  %v3287_v4 = vunpack.i.l.bf16 %v3286_v5  ;;  %v3291_v59 = vpop.permute.xlu1 %3290 }
 0x100   : > { %v3293_v62 = vunpack.i.h.bf16 %v3291_v59  ;;  %v3292_v63 = vunpack.i.l.bf16 %v3291_v59 }
 0x101   : > { %v838_v2 = vsel %vm815_vm3, %v807_v54, %v3287_v4  ;;  %v839_v3 = vsel %vm815_vm3, %v808_v55, %v3288_v58 }
 0x102   : > { %v900_v6 = vpack.c.bf16 %v3293_v62, %v3292_v63  ;;  %v3296_v17 = vpop.permute.xlu0 %3295  ;;  %v869_v61 = vsel %vm846_vm4, %v838_v2, %v3292_v63  ;;  %v870_v16 = vsel %vm846_vm4, %v839_v3, %v3293_v62 }
 0x103   : > { %v3298_v7 = vunpack.i.h.bf16 %v3296_v17  ;;  %v3297_v60 = vunpack.i.l.bf16 %v3296_v17  ;;  %v3301_v31 = vpop.permute.xlu1 %3300  ;;  %v899_v36 = vpack.c.bf16 %v870_v16, %v869_v61 }
 0x104   : > { %v3303_v49 = vunpack.i.h.bf16 %v3301_v31  ;;  %v3302_v10 = vunpack.i.l.bf16 %v3301_v31  ;;  %2639 = vmatprep.mubr.msk.bf16.mxu0 %vm978_vm5, %v900_v6 }
 0x105   : > { %v779_v47 = vsel %vm753_vm1, %v3959_v21, %v3298_v7  ;;  %v778_v35 = vsel %vm753_vm1, %v3956_v20, %v3297_v60 }
 0x106   : > { %v809_v11 = vsel %vm784_vm2, %v778_v35, %v3302_v10  ;;  %v810_v14 = vsel %vm784_vm2, %v779_v47, %v3303_v49  ;;  %1146 = vmatmul.mubr.bf16.gmra.mrb[44].mxu0 %v899_v36  ;;  %v3306_v15 = vpop.permute.xlu0 %3305 }
 0x107   : > { %v3308_v18 = vunpack.i.h.bf16 %v3306_v15  ;;  %v3307_v9 = vunpack.i.l.bf16 %v3306_v15  ;;  %v3311_v19 = vpop.permute.xlu1 %3310 }
 0x108   : > { %v4125_v8 = vunpack.i.h.bf16 %v3311_v19  ;;  %v3312_v22 = vunpack.i.l.bf16 %v3311_v19 }
 0x109   : > { %v840_v23 = vsel %vm815_vm3, %v809_v11, %v3307_v9  ;;  %v841_v24 = vsel %vm815_vm3, %v810_v14, %v3308_v18 }
 0x10a   : > { %v902_v21 = vpack.c.bf16 %v4125_v8, %v3312_v22  ;;  %v871_v20 = vsel %vm846_vm4, %v840_v23, %v3312_v22  ;;  %v872_v25 = vsel %vm846_vm4, %v841_v24, %v4125_v8  ;;  %v4135_v27 = vpack.c.bf16 %v4125_v8, %v4125_v8 }
 0x10b   : > { %v901_v26 = vpack.c.bf16 %v872_v25, %v871_v20 }
 0x10c   : > { %2640 = vmatprep.mubr.msk.bf16.mxu0 %vm978_vm5, %v902_v21 }
 0x10e   : > { %1154 = vmatmul.mubr.bf16.gmra.mrb[48].mxu0 %v901_v26 }
 0x10f   : > { %2641 = vmatprep.mubr.msk.bf16.mxu0 %vm978_vm5, %v4135_v27 }
 0x181   : > { %v4140_v28 = vpop.f32.mrb[0].mxu0 }
 0x182   : > { %v1061_v37 = vpop.f32.mrb[1].mxu0  ;;  %v1180_v42 = vmax.f32 %v4140_v28, 0.0 }
 0x183   : > { %v1062_v1 = vpop.f32.mrb[2].mxu0 }
 0x184   : > { %v1064_v38 = vpop.f32.mrb[3].mxu0 }
 0x189   : > { %v1067_v0 = vpop.f32.mrb[4].mxu0 }
 0x18a   : > { %v4142_v39 = vmax.f32 %v1062_v1, %v1067_v0  ;;  %v1069_v40 = vpop.f32.mrb[5].mxu0 }
 0x18b   : > { %v1070_v33 = vpop.f32.mrb[6].mxu0 }
 0x18c   : > { %v1072_v41 = vpop.f32.mrb[7].mxu0 }
 0x18d   : > { %v3489_v41 = vld [vmem:[%s4721_s2 + $0x40] sm:$0xff]  }
 0x18e   : > { %2754 = vmatprep.subr.bf16.mxu1 %v3489_v41 }
 0x191   : > { %v1075_v57 = vpop.f32.mrb[8].mxu0 }
 0x192   : > { %v4144_v32 = vmax.f32 %v1070_v33, %v1075_v57  ;;  %v1077_v56 = vpop.f32.mrb[9].mxu0  ;;  %v3488_v33 = vld [vmem:[%s4721_s2 + $0x80] sm:$0xff]  }
 0x193   : > { %v1078_v43 = vpop.f32.mrb[10].mxu0  ;;  %v3490_v57 = vld [vmem:[%s4721_s2] sm:$0xff]   ;;  %2866 = vmatprep.subr.bf16.mxu0 %v3488_v33 }
 0x194   : > { %v3314_v13 = vpack.i.bf16 %v4144_v32, %v4142_v39  ;;  %v1080_v12 = vpop.f32.mrb[11].mxu0  ;;  %2867 = vmatpush3.bf16.msra.mxu0 %v3488_v33  ;;  %2755 = vmatpush3.bf16.msra.mxu1 %v3490_v57 }
 0x196   : > { %3315 = vrot.lane.b32.xlu0 %v3314_v13, %s3609_s11  ;;  %v3491_v13 = vld [vmem:[%s4721_s2 + $0x48] sm:$0xff]  }
 0x197   : > { %2756 = vmatprep.subr.bf16.mxu1 %v3491_v13 }
 0x199   : > { %v1083_v44 = vpop.f32.mrb[12].mxu0 }
 0x19a   : > { %v4150_v45 = vmax.f32 %v1078_v43, %v1083_v44  ;;  %v1085_v46 = vpop.f32.mrb[13].mxu0 }
 0x19b   : > { %v1086_v48 = vpop.f32.mrb[14].mxu0  ;;  %v3492_v46 = vld [vmem:[%s4721_s2 + $0x8] sm:$0xff]  }
 0x19c   : > { %v3319_v50 = vpack.i.bf16 %v1180_v42, %v4150_v45  ;;  %v1088_v51 = vpop.f32.mrb[15].mxu0  ;;  %2757 = vmatpush3.bf16.msra.mxu1 %v3492_v46 }
 0x19d   : > { %v3495_v51 = vld [vmem:[%s4721_s2 + $0x58] sm:$0xff]  }
 0x19e   : > { %3320 = vrot.lane.b32.xlu1 %v3319_v50, %s3609_s11  ;;  %v3494_v50 = vld [vmem:[%s4721_s2 + $0x10] sm:$0xff]  }
 0x1a1   : > { %v1091_v52 = vpop.f32.mrb[16].mxu0 }
 0x1a2   : > { %v4156_v53 = vmax.f32 %v1086_v48, %v1091_v52  ;;  %v1093_v54 = vpop.f32.mrb[17].mxu0  ;;  %v3493_v48 = vld [vmem:[%s4721_s2 + $0x50] sm:$0xff]   ;;  %v3496_v52 = vld [vmem:[%s4721_s2 + $0x18] sm:$0xff]  }
 0x1a3   : > { %v1094_v55 = vpop.f32.mrb[18].mxu0  ;;  %2758 = vmatprep.subr.bf16.mxu1 %v3493_v48  ;;  %v3497_v54 = vld [vmem:[%s4721_s2 + $0x60] sm:$0xff]  }
 0x1a4   : > { %1216 = vrot.lane.b32.xlu0 %v4156_v53, %s3609_s11  ;;  %v1096_v5 = vpop.f32.mrb[19].mxu0  ;;  %2759 = vmatpush3.bf16.msra.mxu1 %v3494_v50 }
 0x1a5   : > { %2760 = vmatprep.subr.bf16.mxu1 %v3495_v51  ;;  %v3499_v5 = vld [vmem:[%s4721_s2 + $0x68] sm:$0xff]  }
 0x1a8   : > { %2761 = vmatpush3.bf16.msra.mxu1 %v3496_v52 }
 0x1a9   : > { %v1099_v58 = vpop.f32.mrb[20].mxu0  ;;  %2762 = vmatprep.subr.bf16.mxu1 %v3497_v54 }
 0x1aa   : > { %v4160_v4 = vmax.f32 %v1094_v55, %v1099_v58  ;;  %v1101_v59 = vpop.f32.mrb[21].mxu0  ;;  %v3498_v55 = vld [vmem:[%s4721_s2 + $0x20] sm:$0xff]  }
 0x1ab   : > { %v1102_v62 = vpop.f32.mrb[22].mxu0  ;;  %v3500_v59 = vld [vmem:[%s4721_s2 + $0x28] sm:$0xff]  }
 0x1ac   : > { %v1104_v63 = vpop.f32.mrb[23].mxu0  ;;  %2763 = vmatpush3.bf16.msra.mxu1 %v3498_v55 }
 0x1ad   : > { %2764 = vmatprep.subr.bf16.mxu1 %v3499_v5  ;;  %v3537_v5 = vld [vmem:[%s3772_s23 + $0xc8] sm:$0xff] }
 0x1b0   : > { %2765 = vmatpush3.bf16.msra.mxu1 %v3500_v59 }
 0x1b1   : > { %v1107_v2 = vpop.f32.mrb[24].mxu0 }
 0x1b2   : > { %v4162_v3 = vmax.f32 %v1102_v62, %v1107_v2  ;;  %v1109_v6 = vpop.f32.mrb[25].mxu0  ;;  %v3501_v2 = vld [vmem:[%s4721_s2 + $0x70] sm:$0xff]  }
 0x1b3   : > { %v1110_v17 = vpop.f32.mrb[26].mxu0  ;;  %2766 = vmatprep.subr.bf16.mxu1 %v3501_v2 }
 0x1b4   : > { %v3324_v61 = vpack.i.bf16 %v4162_v3, %v4160_v4  ;;  %v1112_v16 = vpop.f32.mrb[27].mxu0 }
 0x1b6   : > { %3325 = vrot.lane.b32.xlu1 %v3324_v61, %s3609_s11 }
 0x1b9   : > { %v1115_v7 = vpop.f32.mrb[28].mxu0 }
 0x1ba   : > { %v4167_v60 = vmax.f32 %v1110_v17, %v1115_v7  ;;  %3330 = vrot.lane.b32.xlu1 %v3978_v29, %s3604_s30  ;;  %v1117_v31 = vpop.f32.mrb[29].mxu0  ;;  %v3502_v17 = vld [vmem:[%s4721_s2 + $0x30] sm:$0xff]  }
 0x1bb   : > { %v1118_v36 = vpop.f32.mrb[30].mxu0  ;;  %2767 = vmatpush3.bf16.msra.mxu1 %v3502_v17 }
 0x1bc   : > { %v1120_v49 = vpop.f32.mrb[31].mxu0 }
 0x1be   : > { %3335 = vrot.lane.b32.xlu1 %v3982_v34, %s3606_s9 }
 0x1c1   : > { %v1123_v10 = vpop.f32.mrb[32].mxu0 }
 0x1c2   : > { %v4173_v47 = vmax.f32 %v1118_v36, %v1123_v10  ;;  %v1125_v35 = vpop.f32.mrb[33].mxu0  ;;  %479 = vrot.lane.b32.xlu1 %v3608_v30, %s3604_s30  ;;  %v3503_v36 = vld [vmem:[%s4721_s2 + $0x78] sm:$0xff]  }
 0x1c3   : > { %v1126_v11 = vpop.f32.mrb[34].mxu0  ;;  %2768 = vmatprep.subr.bf16.mxu1 %v3503_v36 }
 0x1c4   : > { %v3339_v14 = vpack.i.bf16 %v4173_v47, %v4167_v60  ;;  %v1128_v15 = vpop.f32.mrb[35].mxu0 }
 0x1c6   : > { %3340 = vrot.lane.b32.xlu0 %v3339_v14, %s3609_s11 }
 0x1c9   : > { %v1131_v29 = vpop.f32.mrb[36].mxu0 }
 0x1ca   : > { %v4180_v18 = vmax.f32 %v1126_v11, %v1131_v29  ;;  %v1133_v9 = vpop.f32.mrb[37].mxu0 }
 0x1cb   : > { %v1134_v19 = vpop.f32.mrb[38].mxu0 }
 0x1cc   : > { %v1136_v34 = vpop.f32.mrb[39].mxu0 }
 0x1d1   : > { %v1139_v22 = vpop.f32.mrb[40].mxu0 }
 0x1d2   : > { %v4182_v23 = vmax.f32 %v1134_v19, %v1139_v22  ;;  %v1141_v24 = vpop.f32.mrb[41].mxu0  ;;  %v3505_v19 = vld [vmem:[%s4721_s2 + $0x88] ss:$0 sps:$4 sm:$0xff]  }
 0x1d3   : > { %v1142_v21 = vpop.f32.mrb[42].mxu0  ;;  %3002 = vmatprep.subr.msk.bf16.mxu0 %vm1695_vm6, %v3505_v19  ;;  %v1697_v24 = vsel %vm1695_vm6, %v3505_v19, 0 }
 0x1d4   : > { %v3344_v20 = vpack.i.bf16 %v4182_v23, %v4180_v18  ;;  %v1144_v25 = vpop.f32.mrb[43].mxu0  ;;  %2869 = vmatpush3.bf16.msra.mxu0 %v1697_v24 }
 0x1d5   : > { %2970 = vmatprep.subr.bf16.mxu0 %v3608_v30 }
 0x1d6   : > { %3345 = vrot.lane.b32.xlu0 %v3344_v20, %s3609_s11 }
 0x1d9   : > { %v1147_v26 = vpop.f32.mrb[44].mxu0 }
 0x1da   : > { %646 = vrot.lane.b32.xlu0 %v3608_v30, %s3605_s6  ;;  %v4189_v37 = vmax.f32 %v1142_v21, %v1147_v26  ;;  %v1149_v1 = vpop.f32.mrb[45].mxu0 }
 0x1db   : > { %v1150_v38 = vpop.f32.mrb[46].mxu0 }
 0x1dc   : > { %v1152_v0 = vpop.f32.mrb[47].mxu0 }
 0x1e1   : > { %v1155_v40 = vpop.f32.mrb[48].mxu0 }
 0x1e2   : > { %v4200_v56 = vmax.f32 %v1150_v38, %v1155_v40  ;;  %v1157_v43 = vpop.f32.mrb[49].mxu0 }
 0x1e3   : > { %v4205_v12 = vpop.f32.mrb[50].mxu0 }
 0x1e4   : > { %v1160_v44 = vpop.f32.mrb[51].mxu0  ;;  %v3389_v34 = vpack.i.bf16 %v4200_v56, %v4189_v37 }
 0x208   : > { %v3316_v58 = vpop.permute.xlu0 %3315 }
 0x209   : > { %v3318_v62 = vunpack.i.h.bf16 %v3316_v58  ;;  %v3317_v63 = vunpack.i.l.bf16 %v3316_v58 }
 0x20b   : > { %v1252_v61 = vmax.f32 %v4144_v32, %v3318_v62  ;;  %v1251_v16 = vmax.f32 %v4142_v39, %v3317_v63  ;;  %v3504_v32 = vld [vmem:[%s4721_s2 + $0x38] sm:$0xff]  }
 0x20c   : > { %2769 = vmatpush3.bf16.msra.mxu1 %v3504_v32 }
 0x20d   : > { %v4253_v35 = vmax.f32 %v1252_v61, 0.0  ;;  %v4255_v39 = vmax.f32 %v1251_v16, 0.0  ;;  %2886 = vmatprep.subr.bf16.mxu1 %v3608_v30  ;;  %v3538_v61 = vld [vmem:[%s3772_s23 + $0xd8] sm:$0xff] }
 0x210   : > { %v3321_v6 = vpop.permute.xlu1 %3320 }
 0x211   : > { %v3323_v7 = vunpack.i.h.bf16 %v3321_v6  ;;  %v3322_v31 = vunpack.i.l.bf16 %v3321_v6 }
 0x213   : > { %v4247_v49 = vmax.f32 %v1180_v42, %v3323_v7  ;;  %v1253_v10 = vmax.f32 %v4150_v45, %v3322_v31 }
 0x215   : > { %v1264_v11 = vmax.f32 %v4247_v49, 0.0  ;;  %v4258_v14 = vmax.f32 %v1253_v10, 0.0 }
 0x216   : > { %v1217_v15 = vpop.permute.xlu0 %1216 }
 0x217   : > { %v1254_v28 = vmax.f32 %v4156_v53, %v1217_v15  ;;  %v3359_v42 = vpack.i.bf16 %v4258_v14, %v4253_v35  ;;  %v3349_v45 = vpack.i.bf16 %v4255_v39, %v1264_v11  ;;  %v3354_v53 = vpack.i.bf16 %v4253_v35, %v4255_v39 }
 0x219   : > { %v4267_v29 = vmax.f32 %v1254_v28, 0.0  ;;  %3360 = vrot.lane.b32.xlu1 %v3359_v42, %s3610_s13  ;;  %3350 = vrot.lane.b32.xlu0 %v3349_v45, %s3606_s9 }
 0x21b   : > { %v3369_v9 = vpack.i.bf16 %v4267_v29, %v4258_v14 }
 0x21d   : > { %3370 = vrot.lane.b32.xlu1 %v3369_v9, %s3611_s14  ;;  %3355 = vrot.lane.b32.xlu0 %v3354_v53, %s3607_s10 }
 0x221   : > { %3365 = vrot.lane.b32.xlu0 %v3359_v42, %s3606_s9 }
 0x225   : > { %3375 = vrot.lane.b32.xlu0 %v3369_v9, %s3607_s10 }
 0x228   : > { %v3326_v22 = vpop.permute.xlu1 %3325 }
 0x229   : > { %v3328_v21 = vunpack.i.h.bf16 %v3326_v22  ;;  %v3327_v20 = vunpack.i.l.bf16 %v3326_v22  ;;  %3390 = vrot.lane.b32.xlu0 %v3389_v34, %s3609_s11 }
 0x22b   : > { %v1256_v25 = vmax.f32 %v4162_v3, %v3328_v21  ;;  %v1255_v26 = vmax.f32 %v4160_v4, %v3327_v20  ;;  %v1193_v4 = vmax.f32 %v4205_v12, 0.0 }
 0x22c   : > { %v3331_v13 = vpop.permute.xlu1 %3330 }
 0x22d   : > { %v4290_v1 = vmax.f32 %v1256_v25, 0.0  ;;  %v4292_v38 = vmax.f32 %v1255_v26, 0.0  ;;  %v3333_v50 = vunpack.i.h.bf16 %v3331_v13  ;;  %v3332_v51 = vunpack.i.l.bf16 %v3331_v13 }
 0x22f   : > { %v3379_v0 = vpack.i.bf16 %v4292_v38, %v4267_v29  ;;  %v3394_v40 = vpack.i.bf16 %v4290_v1, %v4292_v38  ;;  %v780_v58 = vsel %vm753_vm1, %v3537_v5, %v3332_v51 }
 0x230   : > { %v3336_v52 = vpop.permute.xlu1 %3335 }
 0x231   : > { %3380 = vrot.lane.b32.xlu1 %v3379_v0, %s3610_s13  ;;  %3395 = vrot.lane.b32.xlu0 %v3394_v40, %s3607_s10  ;;  %v4322_v62 = vunpack.i.h.bf16 %v3336_v52 }
 0x234   : > { %v480_v59 = vpop.permute.xlu1 %479 }
 0x235   : > { %3385 = vrot.lane.b32.xlu1 %v3394_v40, %s3611_s14  ;;  %3400 = vrot.lane.b32.xlu0 %v3379_v0, %s3606_s9  ;;  %v782_v16 = vsel %vm753_vm1, %v3538_v61, %v480_v59  ;;  %v783_v10 = vsel %vm753_vm1, 0.0, %v480_v59 }
 0x236   : > { %v813_v9 = vsel %vm784_vm2, %v782_v16, %v4322_v62 }
 0x238   : > { %v3341_v3 = vpop.permute.xlu0 %3340 }
 0x239   : > { %v3343_v33 = vunpack.i.h.bf16 %v3341_v3  ;;  %v3342_v41 = vunpack.i.l.bf16 %v3341_v3  ;;  %1234 = vrot.lane.b32.xlu1 %v1193_v4, %s3609_s11 }
 0x23b   : > { %v1258_v57 = vmax.f32 %v4173_v47, %v3343_v33  ;;  %v1257_v43 = vmax.f32 %v4167_v60, %v3342_v41  ;;  %v3337_v60 = vunpack.i.l.bf16 %v3336_v52  ;;  %v3536_v47 = vld [vmem:[%s3772_s23 + $0xd0] sm:$0xff] }
 0x23c   : > { %v781_v55 = vsel %vm753_vm1, %v3536_v47, %v3333_v50 }
 0x23d   : > { %v4308_v44 = vmax.f32 %v1257_v43, 0.0  ;;  %v4310_v46 = vmax.f32 %v1258_v57, 0.0  ;;  %v811_v17 = vsel %vm784_vm2, %v780_v58, %v3337_v60  ;;  %v812_v7 = vsel %vm784_vm2, %v781_v55, %v4322_v62 }
 0x23f   : > { %v3404_v48 = vpack.i.bf16 %v4308_v44, %v4290_v1  ;;  %v3409_v54 = vpack.i.bf16 %v4310_v46, %v4308_v44 }
 0x241   : > { %3405 = vrot.lane.b32.xlu1 %v3404_v48, %s3610_s13 }
 0x245   : > { %3410 = vrot.lane.b32.xlu1 %v3409_v54, %s3611_s14 }
 0x248   : > { %v3346_v63 = vpop.permute.xlu0 %3345 }
 0x249   : > { %v3348_v2 = vunpack.i.h.bf16 %v3346_v63  ;;  %v3347_v6 = vunpack.i.l.bf16 %v3346_v63  ;;  %3420 = vrot.lane.b32.xlu1 %v3409_v54, %s3607_s10 }
 0x24b   : > { %v1260_v31 = vmax.f32 %v4182_v23, %v3348_v2  ;;  %v1259_v36 = vmax.f32 %v4180_v18, %v3347_v6  ;;  %v814_v23 = vsel %vm784_vm2, %v783_v10, %v4322_v62 }
 0x24c   : > { %v647_v32 = vpop.permute.xlu0 %646 }
 0x24d   : > { %v4333_v15 = vmax.f32 %v1260_v31, 0.0  ;;  %v4335_v28 = vmax.f32 %v1259_v36, 0.0  ;;  %v842_v42 = vsel %vm815_vm3, %v811_v17, %v647_v32  ;;  %v843_v45 = vsel %vm815_vm3, %v812_v7, %v647_v32  ;;  %3430 = vrot.lane.b32.xlu1 %v3404_v48, %s3606_s9 }
 0x24e   : > { %v873_v18 = vsel %vm846_vm4, %v842_v42, %v4125_v8  ;;  %v874_v53 = vsel %vm846_vm4, %v843_v45, %v4125_v8  ;;  %v844_v22 = vsel %vm815_vm3, %v813_v9, %v647_v32  ;;  %v845_v24 = vsel %vm815_vm3, %v814_v23, %v647_v32 }
 0x24f   : > { %v903_v19 = vpack.c.bf16 %v874_v53, %v873_v18  ;;  %v3414_v34 = vpack.i.bf16 %v4333_v15, %v4335_v28  ;;  %v3424_v21 = vpack.i.bf16 %v4335_v28, %v4310_v46  ;;  %v875_v20 = vsel %vm846_vm4, %v844_v22, %v4125_v8 }
 0x250   : > { %v876_v25 = vsel %vm846_vm4, %v845_v24, %v4125_v8 }
 0x251   : > { %1162 = vmatmul.mubr.bf16.gmra.mrb[52].mxu0 %v903_v19  ;;  %3415 = vrot.lane.b32.xlu0 %v3414_v34, %s3611_s14  ;;  %v905_v26 = vpack.c.bf16 %v876_v25, %v875_v20  ;;  %v906_v0 = vpack.c.bf16 %v876_v25, %v876_v25 }
 0x252   : > { %2642 = vmatprep.mubr.msk.bf16.mxu0 %vm978_vm5, %v4135_v27 }
 0x255   : > { %3425 = vrot.lane.b32.xlu0 %v3424_v21, %s3610_s13 }
 0x259   : > { %1168 = vmatmul.mubr.bf16.gmra.mrb[56].mxu0 %v905_v26  ;;  %3435 = vrot.lane.b32.xlu0 %v3414_v34, %s3607_s10 }
 0x25a   : > { %2643 = vmatprep.mubr.msk.bf16.mxu0 %vm978_vm5, %v4135_v27 }
 0x25d   : > { %3440 = vrot.lane.b32.xlu0 %v3424_v21, %s3606_s9 }
 0x261   : > { %1174 = vmatmul.mubr.bf16.gmra.mrb[60].mxu0 %v906_v0 }
 0x28b   : > { %v3361_v40 = vpop.permute.xlu1 %3360  ;;  %v3351_v3 = vpop.permute.xlu0 %3350 }
 0x28c   : > { %v3353_v33 = vunpack.i.h.bf16 %v3351_v3  ;;  %v3352_v41 = vunpack.i.l.bf16 %v3351_v3  ;;  %v3363_v57 = vunpack.i.h.bf16 %v3361_v40  ;;  %v3362_v43 = vunpack.i.l.bf16 %v3361_v40 }
 0x28e   : > { %v1449_v27 = vsel %vm784_vm2, %v1264_v11, %v3353_v33  ;;  %v1448_v60 = vsel %vm784_vm2, 0.0, %v3352_v41 }
 0x28f   : > { %v3371_v13 = vpop.permute.xlu1 %3370  ;;  %v3356_v48 = vpop.permute.xlu0 %3355 }
 0x290   : > { %v3373_v50 = vunpack.i.h.bf16 %v3371_v13  ;;  %v3372_v51 = vunpack.i.l.bf16 %v3371_v13  ;;  %v3358_v52 = vunpack.i.h.bf16 %v3356_v48  ;;  %v3357_v54 = vunpack.i.l.bf16 %v3356_v48 }
 0x292   : > { %v1512_v47 = vpack.c.bf16 %v3373_v50, %v3372_v51  ;;  %v1481_v55 = vsel %vm1480_vm7, %v3357_v54, %v3362_v43  ;;  %v1482_v5 = vsel %vm1480_vm7, %v3358_v52, %v3363_v57  ;;  %v1464_v58 = vsel %vm846_vm4, %v1448_v60, %v3357_v54 }
 0x293   : > { %v3366_v59 = vpop.permute.xlu0 %3365  ;;  %v1496_v63 = vsel %vm1495_vm8, %v1481_v55, %v3372_v51  ;;  %v1497_v2 = vsel %vm1495_vm8, %v1482_v5, %v3373_v50  ;;  %v1465_v6 = vsel %vm846_vm4, %v1449_v27, %v3358_v52 }
 0x294   : > { %2870 = vmatprep.mubr.msk.bf16.mxu0 %vm1673_vm9, %v1512_v47  ;;  %v1511_v49 = vpack.c.bf16 %v1497_v2, %v1496_v63  ;;  %v1510_v11 = vpack.c.bf16 %v1465_v6, %v1464_v58  ;;  %v3368_v9 = vunpack.i.h.bf16 %v3366_v59  ;;  %v3367_v23 = vunpack.i.l.bf16 %v3366_v59 }
 0x296   : > { %1731 = vmatprep.mubr.bf16.mxu1 %v1511_v49  ;;  %v1451_v22 = vsel %vm784_vm2, %v4253_v35, %v3368_v9  ;;  %v1450_v24 = vsel %vm784_vm2, %v4255_v39, %v3367_v23 }
 0x297   : > { %v3376_v17 = vpop.permute.xlu0 %3375  ;;  %1732 = vmatmul.mubr.bf16.vlgmr.msra.gmra.mrb[0].mxu1 %v1510_v11 }
 0x298   : > { %v3378_v18 = vunpack.i.h.bf16 %v3376_v17  ;;  %v3377_v53 = vunpack.i.l.bf16 %v3376_v17 }
 0x29a   : > { %v1466_v0 = vsel %vm846_vm4, %v1450_v24, %v3377_v53  ;;  %v1467_v40 = vsel %vm846_vm4, %v1451_v22, %v3378_v18 }
 0x29b   : > { %v3391_v61 = vpop.permute.xlu0 %3390  ;;  %v1513_v13 = vpack.c.bf16 %v1467_v40, %v1466_v0 }
 0x29c   : > { %v3393_v16 = vunpack.i.h.bf16 %v3391_v61  ;;  %v3392_v7 = vunpack.i.l.bf16 %v3391_v61 }
 0x29e   : > { %v1262_v31 = vmax.f32 %v4200_v56, %v3393_v16  ;;  %v1261_v36 = vmax.f32 %v4189_v37, %v3392_v7 }
 0x2a0   : > { %v4379_v10 = vmax.f32 %v1261_v36, 0.0  ;;  %v4381_v32 = vmax.f32 %v1262_v31, 0.0 }
 0x2a2   : > { %v3444_v42 = vpack.i.bf16 %v4379_v10, %v4333_v15  ;;  %v3449_v56 = vpack.i.bf16 %v4381_v32, %v4379_v10 }
 0x2a3   : > { %v3381_v45 = vpop.permute.xlu1 %3380  ;;  %v3396_v26 = vpop.permute.xlu0 %3395 }
 0x2a4   : > { %3445 = vrot.lane.b32.xlu1 %v3444_v42, %s3610_s13  ;;  %v3382_v19 = vunpack.i.l.bf16 %v3381_v45  ;;  %v3383_v34 = vunpack.i.h.bf16 %v3381_v45  ;;  %v3398_v5 = vunpack.i.h.bf16 %v3396_v26  ;;  %v3397_v58 = vunpack.i.l.bf16 %v3396_v26 }
 0x2a6   : > { %v1483_v25 = vsel %vm1480_vm7, %v3377_v53, %v3382_v19  ;;  %v1484_v3 = vsel %vm1480_vm7, %v3378_v18, %v3383_v34 }
 0x2a7   : > { %v3386_v37 = vpop.permute.xlu1 %3385  ;;  %v3401_v50 = vpop.permute.xlu0 %3400 }
 0x2a8   : > { %v3388_v21 = vunpack.i.h.bf16 %v3386_v37  ;;  %v3387_v20 = vunpack.i.l.bf16 %v3386_v37  ;;  %3450 = vrot.lane.b32.xlu1 %v3449_v56, %s3611_s14  ;;  %v3403_v52 = vunpack.i.h.bf16 %v3401_v50  ;;  %v3402_v54 = vunpack.i.l.bf16 %v3401_v50 }
 0x2aa   : > { %v1515_v33 = vpack.c.bf16 %v3388_v21, %v3387_v20  ;;  %v1498_v41 = vsel %vm1495_vm8, %v1483_v25, %v3387_v20  ;;  %v1499_v57 = vsel %vm1495_vm8, %v1484_v3, %v3388_v21  ;;  %v1453_v47 = vsel %vm784_vm2, %v4267_v29, %v3403_v52 }
 0x2ab   : > { %v1235_v35 = vpop.permute.xlu1 %1234  ;;  %v1514_v43 = vpack.c.bf16 %v1499_v57, %v1498_v41  ;;  %v1452_v55 = vsel %vm784_vm2, %v4258_v14, %v3402_v54  ;;  %v1469_v17 = vsel %vm846_vm4, %v1453_v47, %v3398_v5 }
 0x2ac   : > { %v1263_v39 = vmax.f32 %v1193_v4, %v1235_v35  ;;  %2871 = vmatmul.mubr.msk.bf16.vlgmr.msra.gmra.mrb[64].mxu0 %vm1673_vm9, %v1515_v33  ;;  %3460 = vrot.lane.b32.xlu1 %v3449_v56, %s3607_s10  ;;  %v1468_v11 = vsel %vm846_vm4, %v1452_v55, %v3397_v58 }
 0x2ad   : > { %1739 = vmatprep.mubr.bf16.mxu1 %v1514_v43  ;;  %v1516_v31 = vpack.c.bf16 %v1469_v17, %v1468_v11 }
 0x2ae   : > { %v4403_v48 = vmax.f32 %v1263_v39, 0.0  ;;  %1740 = vmatmul.mubr.bf16.gmra.mrb[4].mxu1 %v1513_v13 }
 0x2b0   : > { %3470 = vrot.lane.b32.xlu1 %v3444_v42, %s3606_s9  ;;  %v3454_v51 = vpack.i.bf16 %v3608_v30, %v4403_v48  ;;  %v3464_v4 = vpack.i.bf16 %v4403_v48, %v4381_v32 }
 0x2b2   : > { %3455 = vrot.lane.b32.xlu0 %v3454_v51, %s3611_s14 }
 0x2b3   : > { %v3406_v12 = vpop.permute.xlu1 %3405 }
 0x2b4   : > { %1397 = vrot.lane.b32.xlu1 %v3608_v30, %s3610_s13  ;;  %v3408_v27 = vunpack.i.h.bf16 %v3406_v12  ;;  %v3407_v60 = vunpack.i.l.bf16 %v3406_v12 }
 0x2b6   : > { %3465 = vrot.lane.b32.xlu0 %v3464_v4, %s3610_s13  ;;  %v1486_v6 = vsel %vm1480_vm7, %v3398_v5, %v3408_v27  ;;  %v1485_v49 = vsel %vm1480_vm7, %v3397_v58, %v3407_v60 }
 0x2b7   : > { %v3411_v59 = vpop.permute.xlu1 %3410 }
 0x2b8   : > { %v3413_v63 = vunpack.i.h.bf16 %v3411_v59  ;;  %v3412_v2 = vunpack.i.l.bf16 %v3411_v59 }
 0x2ba   : > { %v1518_v61 = vpack.c.bf16 %v3413_v63, %v3412_v2  ;;  %1358 = vrot.lane.b32.xlu0 %v4403_v48, %s3607_s10  ;;  %v1500_v14 = vsel %vm1495_vm8, %v1485_v49, %v3412_v2  ;;  %v1501_v29 = vsel %vm1495_vm8, %v1486_v6, %v3413_v63  ;;  %s2751_s10 = sshll.u32 %s2612_s22, 7  ;;  %s3613_s22 = smov [#allocation3]  }
 0x2bb   : > { %v3421_v16 = vpop.permute.xlu1 %3420  ;;  %v1517_v7 = vpack.c.bf16 %v1501_v29, %v1500_v14  ;;  %s4675_s26 = scalar_lea.hbm %s4724_s5, %s2751_s10  ;;  %s3543_s30 = sshll.u32 %s3613_s22, 4  ;;  %s3544_s30 = int_to_ptr.vmem [resolvable:$false] %s3543_s30 }
 0x2bc   : > { %2874 = vmatprep.mubr.msk.bf16.mxu0 %vm1673_vm9, %v1518_v61  ;;  %v3423_v37 = vunpack.i.h.bf16 %v3421_v16  ;;  %v3422_v22 = vunpack.i.l.bf16 %v3421_v16  ;;  %s3545_s13 = scalar_lea.vmem %s3544_s30, 256 }
 0x2bd   : > { %1747 = vmatprep.mubr.bf16.mxu1 %v1517_v7 }
 0x2be   : > { %3475 = vrot.lane.b32.xlu0 %v3464_v4, %s3606_s9  ;;  %1748 = vmatmul.mubr.bf16.gmra.mrb[8].mxu1 %v1516_v31  ;;  %s2618_s9 = sshll.u32 %s3761_s12, 3 }
 0x2bf   : > { %v3431_v36 = vpop.permute.xlu1 %3430  ;;  %s364_s17 = scalar_lea.vmem [#allocation3], %s2618_s9 }
 0x2c0   : > { %v3433_v42 = vunpack.i.h.bf16 %v3431_v36  ;;  %v3432_v45 = vunpack.i.l.bf16 %v3431_v36  ;;  %s2548_s6 = sshll.u32 %s364_s17, 4  ;;  %s4677_s6 = int_to_ptr.vmem [resolvable:$true] %s2548_s6 }
 0x2c1   : > { %s3539_s8 = scalar_lea.vmem %s4677_s6, 128  ;;  %p3546_p2 = scmp.lt.s32.totalorder %s4677_s6, %s3544_s30 }
 0x2c2   : > { %v1455_v19 = vsel %vm784_vm2, %v4290_v1, %v3433_v42  ;;  %v1454_v34 = vsel %vm784_vm2, %v4292_v38, %v3432_v45  ;;  %p3540_p13 = scmp.ne.s32.totalorder %s4677_s6, %s3539_s8  ;;  %p3547_p3 = scmp.lt.s32.totalorder %s3545_s13, %s3539_s8 }
 0x2c3   : > { %v3416_v9 = vpop.permute.xlu0 %3415  ;;  %v1470_v26 = vsel %vm846_vm4, %v1454_v34, %v3422_v22  ;;  %v1471_v0 = vsel %vm846_vm4, %v1455_v19, %v3423_v37 }
 0x2c4   : > { %v3418_v23 = vunpack.i.h.bf16 %v3416_v9  ;;  %v3417_v18 = vunpack.i.l.bf16 %v3416_v9  ;;  %v1519_v3 = vpack.c.bf16 %v1471_v0, %v1470_v26  ;;  %p3541_p0 = pnand %p3540_p13, %p3682_p6  ;;  %p3548_p4 = por %p3547_p3, %p3546_p2 }
 0x2c6   : > { %v1521_v53 = vpack.c.bf16 %v3418_v23, %v3417_v18  ;;  %p3542_p1 = pneg %p3541_p0 }
 0x2c7   : > { %v3426_v56 = vpop.permute.xlu0 %3425 }
 0x2c8   : > { %v3428_v24 = vunpack.i.h.bf16 %v3426_v56  ;;  %v3427_v21 = vunpack.i.l.bf16 %v3426_v56  ;;  %2875 = vmatmul.mubr.msk.bf16.gmra.mrb[68].mxu0 %vm1673_vm9, %v1521_v53  ;;  %p3549_p5 = pnand %p3548_p4, %p3542_p1 }
 0x2ca   : > { %v1487_v20 = vsel %vm1480_vm7, %v3422_v22, %v3427_v21  ;;  %v1488_v25 = vsel %vm1480_vm7, %v3423_v37, %v3428_v24 }
 0x2cb   : > { %v1502_v1 = vsel %vm1495_vm8, %v1487_v20, %v3417_v18  ;;  %v1503_v40 = vsel %vm1495_vm8, %v1488_v25, %v3418_v23  ;;  %v3436_v33 = vpop.permute.xlu0 %3435 }
 0x2cc   : > { %v1520_v38 = vpack.c.bf16 %v1503_v40, %v1502_v1  ;;  %v3438_v52 = vunpack.i.h.bf16 %v3436_v33  ;;  %v3437_v54 = vunpack.i.l.bf16 %v3436_v33 }
 0x2ce   : > { %1755 = vmatprep.mubr.bf16.mxu1 %v1520_v38 }
 0x2cf   : > { %1756 = vmatmul.mubr.bf16.gmra.mrb[12].mxu1 %v1519_v3  ;;  %v3441_v41 = vpop.permute.xlu0 %3440 }
 0x2d0   : > { %v3443_v35 = vunpack.i.h.bf16 %v3441_v41  ;;  %v3442_v57 = vunpack.i.l.bf16 %v3441_v41 }
 0x2d2   : > { %v1457_v50 = vsel %vm784_vm2, %v4310_v46, %v3443_v35  ;;  %v1456_v51 = vsel %vm784_vm2, %v4308_v44, %v3442_v57 }
 0x2d3   : > { %v1472_v55 = vsel %vm846_vm4, %v1456_v51, %v3437_v54  ;;  %v1473_v5 = vsel %vm846_vm4, %v1457_v50, %v3438_v52 }
 0x2d4   : > { %v1522_v2 = vpack.c.bf16 %v1473_v5, %v1472_v55 }
 0x316   : > { %v3446_v39 = vpop.permute.xlu1 %3445 }
 0x317   : > { %v3448_v43 = vunpack.i.h.bf16 %v3446_v39  ;;  %v3447_v13 = vunpack.i.l.bf16 %v3446_v39 }
 0x319   : > { %v1490_v60 = vsel %vm1480_vm7, %v3438_v52, %v3448_v43  ;;  %v1489_v47 = vsel %vm1480_vm7, %v3437_v54, %v3447_v13 }
 0x31a   : > { %v3451_v12 = vpop.permute.xlu1 %3450 }
 0x31b   : > { %v3453_v4 = vunpack.i.h.bf16 %v3451_v12  ;;  %v3452_v27 = vunpack.i.l.bf16 %v3451_v12 }
 0x31d   : > { %v1524_v58 = vpack.c.bf16 %v3453_v4, %v3452_v27  ;;  %v1504_v59 = vsel %vm1495_vm8, %v1489_v47, %v3452_v27  ;;  %v1505_v46 = vsel %vm1495_vm8, %v1490_v60, %v3453_v4 }
 0x31e   : > { %v3461_v63 = vpop.permute.xlu1 %3460  ;;  %v1523_v44 = vpack.c.bf16 %v1505_v46, %v1504_v59 }
 0x31f   : > { %2878 = vmatprep.mubr.msk.bf16.mxu0 %vm1673_vm9, %v1524_v58  ;;  %v3462_v9 = vunpack.i.l.bf16 %v3461_v63  ;;  %v3463_v19 = vunpack.i.h.bf16 %v3461_v63  ;;  %v1462_v58 = vsel %vm784_vm2, %v4403_v48, %v4322_v62  ;;  %v3507_v48 = vld [vmem:[%s4722_s3 + $0x24] sm:$0xff]  }
 0x320   : > { %1763 = vmatprep.mubr.bf16.mxu1 %v1523_v44 }
 0x321   : > { %1764 = vmatmul.mubr.bf16.gmra.mrb[16].mxu1 %v1522_v2 }
 0x322   : > { %v3471_v6 = vpop.permute.xlu1 %3470 }
 0x323   : > { %v3472_v49 = vunpack.i.l.bf16 %v3471_v6  ;;  %v3473_v11 = vunpack.i.h.bf16 %v3471_v6 }
 0x324   : > { %v3456_v17 = vpop.permute.xlu0 %3455  ;;  %v1163_v61 = vpop.f32.mrb[52].mxu0 }
 0x325   : > { %v3458_v14 = vunpack.i.h.bf16 %v3456_v17  ;;  %v3457_v29 = vunpack.i.l.bf16 %v3456_v17  ;;  %v1164_v16 = vpop.f32.mrb[53].mxu0  ;;  %v1458_v31 = vsel %vm784_vm2, %v4335_v28, %v3472_v49  ;;  %v1459_v23 = vsel %vm784_vm2, %v4333_v15, %v3473_v11  ;;  %v3506_v28 = vld [vmem:[%s4722_s3 + $0x1c] sm:$0xff]  }
 0x326   : > { %v1165_v7 = vpop.f32.mrb[54].mxu0  ;;  %v1398_v18 = vpop.permute.xlu1 %1397  ;;  %v1474_v37 = vsel %vm846_vm4, %v1458_v31, %v3462_v9  ;;  %v1475_v21 = vsel %vm846_vm4, %v1459_v23, %v3463_v19  ;;  %2887 = vmatpush3.bf16.msra.mxu1 %v3506_v28 }
 0x327   : > { %v1527_v36 = vpack.c.bf16 %v3458_v14, %v3457_v29  ;;  %v1166_v42 = vpop.f32.mrb[55].mxu0  ;;  %v1530_v45 = vpack.c.bf16 %v3458_v14, %v3458_v14  ;;  %v1494_v22 = vsel %vm1480_vm7, %v4125_v8, %v1398_v18  ;;  %2888 = vmatprep.subr.bf16.mxu1 %v3608_v30  ;;  %v1525_v35 = vpack.c.bf16 %v1475_v21, %v1474_v37 }
 0x328   : > { %v3466_v53 = vpop.permute.xlu0 %3465  ;;  %v1509_v3 = vsel %vm1495_vm8, %v1494_v22, %v3458_v14 }
 0x329   : > { %v3468_v34 = vunpack.i.h.bf16 %v3466_v53  ;;  %v3467_v56 = vunpack.i.l.bf16 %v3466_v53  ;;  %2879 = vmatmul.mubr.msk.bf16.gmra.mrb[72].mxu0 %vm1673_vm9, %v1527_v36  ;;  %v1532_v5 = vpack.c.bf16 %v1509_v3, %v1509_v3 }
 0x32a   : > { %2882 = vmatprep.mubr.msk.bf16.mxu0 %vm1673_vm9, %v1530_v45  ;;  %2889 = vmatpush3.bf16.msra.mxu1 %v3507_v48 }
 0x32b   : > { %v1491_v15 = vsel %vm1480_vm7, %v3462_v9, %v3467_v56  ;;  %v1492_v24 = vsel %vm1480_vm7, %v3463_v19, %v3468_v34  ;;  %2890 = vmatprep.subr.bf16.mxu1 %v3608_v30 }
 0x32c   : > { %v1359_v20 = vpop.permute.xlu0 %1358  ;;  %v1169_v25 = vpop.f32.mrb[56].mxu0  ;;  %v1506_v26 = vsel %vm1495_vm8, %v1491_v15, %v3457_v29  ;;  %v1507_v0 = vsel %vm1495_vm8, %v1492_v24, %v3458_v14 }
 0x32d   : > { %v1493_v1 = vsel %vm1480_vm7, %v1359_v20, %v1398_v18  ;;  %v1170_v40 = vpop.f32.mrb[57].mxu0  ;;  %v1526_v38 = vpack.c.bf16 %v1507_v0, %v1506_v26 }
 0x32e   : > { %v1508_v33 = vsel %vm1495_vm8, %v1493_v1, %v3458_v14  ;;  %v1171_v41 = vpop.f32.mrb[58].mxu0 }
 0x32f   : > { %v1172_v57 = vpop.f32.mrb[59].mxu0  ;;  %1771 = vmatprep.mubr.bf16.mxu1 %v1526_v38  ;;  %v1529_v39 = vpack.c.bf16 %v1509_v3, %v1508_v33 }
 0x330   : > { %v3476_v43 = vpop.permute.xlu0 %3475  ;;  %1772 = vmatmul.mubr.bf16.gmra.mrb[20].mxu1 %v1525_v35 }
 0x331   : > { %v3478_v13 = vunpack.i.h.bf16 %v3476_v43  ;;  %v3477_v50 = vunpack.i.l.bf16 %v3476_v43  ;;  %1779 = vmatprep.mubr.bf16.mxu1 %v1529_v39  ;;  %2883 = vmatmul.mubr.msk.bf16.gmra.mrb[76].mxu0 %vm1673_vm9, %v1530_v45 }
 0x332   : > { %2974 = vmatprep.mubr.msk.bf16.mxu0 %vm3612_vm10, %v3608_v30 }
 0x333   : > { %v1461_v51 = vsel %vm784_vm2, %v4381_v32, %v3478_v13  ;;  %v1460_v52 = vsel %vm784_vm2, %v4379_v10, %v3477_v50  ;;  %v1463_v10 = vsel %vm784_vm2, 0.0, %v4322_v62  ;;  %v1478_v32 = vsel %vm846_vm4, %v1462_v58, %v4125_v8  ;;  %v3508_v62 = vld [vmem:[%s4722_s3 + $0x2c] sm:$0xff]  }
 0x334   : > { %v1175_v54 = vpop.f32.mrb[60].mxu0  ;;  %v1476_v12 = vsel %vm846_vm4, %v1460_v52, %v1359_v20  ;;  %v1477_v4 = vsel %vm846_vm4, %v1461_v51, %v4125_v8  ;;  %v1479_v59 = vsel %vm846_vm4, %v1463_v10, %v4125_v8  ;;  %2891 = vmatpush3.bf16.msra.mxu1 %v3508_v62  ;;  %v3509_v8 = vld [vmem:[%s4722_s3 + $0x34] ss:$0 sps:$4 sm:$0xff]   ;;  %v3511_v62 = vld [vmem:[%s4722_s3 + $0x8] sm:$0xff]  }
 0x335   : > { %v1176_v27 = vpop.f32.mrb[61].mxu0  ;;  %v1528_v60 = vpack.c.bf16 %v1477_v4, %v1476_v12  ;;  %v1531_v46 = vpack.c.bf16 %v1479_v59, %v1478_v32  ;;  %2892 = vmatprep.subr.bf16.mxu1 %v3608_v30  ;;  %v1976_v61 = vsel %vm1695_vm6, %v3509_v8, 0 }
 0x336   : > { %v1177_v47 = vpop.f32.mrb[62].mxu0 }
 0x337   : > { %v1178_v55 = vpop.f32.mrb[63].mxu0 }
 0x338   : > { %1780 = vmatmul.mubr.bf16.gmra.mrb[24].mxu1 %v1528_v60 }
 0x339   : > { %1785 = vmatprep.mubr.bf16.mxu1 %v1532_v5  ;;  %2893 = vmatpush3.bf16.msra.mxu1 %v1976_v61 }
 0x33a   : > { %2898 = vmatprep.subr.bf16.mxu1 %v3608_v30 }
 0x340   : > { %1786 = vmatmul.mubr.bf16.gmra.mrb[28].mxu1 %v1531_v46 }
 0x341   : > { %2894 = vmatprep.mubr.msk.bf16.mxu1 %vm3612_vm10, %v3608_v30 }
 0x36a   : > { %v2770_v63 = vpop.f32.mrb[0].mxu1 }
 0x36b   : > { %v2771_v44 = vpop.f32.mrb[1].mxu1 }
 0x36c   : > { %v2772_v2 = vadd.f32 %v2771_v44, %v2770_v63  ;;  %v2773_v6 = vpop.f32.mrb[2].mxu1  ;;  %v3510_v44 = vld [vmem:[%s4722_s3] sm:$0xff]  }
 0x36d   : > { %v2774_v49 = vpop.f32.mrb[3].mxu1 }
 0x36e   : > { %v2775_v11 = vadd.f32 %v2774_v49, %v2773_v6 }
 0x37f   : > { %v2872_v17 = vpop.f32.mrb[64].mxu0 }
 0x380   : > { %v1826_v14 = vpop.f32.mrb[65].mxu0 }
 0x381   : > { %v4500_v29 = vadd.f32 %v2772_v2, %v1826_v14  ;;  %v2873_v16 = vpop.f32.mrb[66].mxu0  ;;  %v2776_v7 = vpop.f32.mrb[4].mxu1 }
 0x382   : > { %v1829_v31 = vpop.f32.mrb[67].mxu0  ;;  %v2777_v42 = vpop.f32.mrb[5].mxu1 }
 0x383   : > { %v1885_v36 = vmax.f32 %v4500_v29, 0.0  ;;  %v1830_v45 = vadd.f32 %v2775_v11, %v1829_v31  ;;  %v2778_v9 = vadd.f32 %v2777_v42, %v2776_v7  ;;  %v2779_v23 = vpop.f32.mrb[6].mxu1 }
 0x384   : > { %v2780_v18 = vpop.f32.mrb[7].mxu1 }
 0x385   : > { %1899 = vrot.lane.b32.xlu0 %v1885_v36, %s3609_s11  ;;  %v1835_v53 = vadd.f32 %v2872_v17, %v2778_v9  ;;  %v2781_v19 = vadd.f32 %v2780_v18, %v2779_v23 }
 0x387   : > { %v1886_v34 = vmax.f32 %v1830_v45, %v1835_v53  ;;  %v1838_v56 = vadd.f32 %v2873_v16, %v2781_v19  ;;  %v3512_v45 = vld [vmem:[%s4722_s3 + $0x10] sm:$0xff]   ;;  %v3513_v53 = vld [vmem:[%s4722_s3 + $0x18] ss:$0 sps:$4 sm:$0xff]  }
 0x389   : > { %1901 = vrot.lane.b32.xlu1 %v1886_v34, %s3609_s11 }
 0x391   : > { %v2782_v37 = vpop.f32.mrb[8].mxu1 }
 0x392   : > { %v2783_v28 = vpop.f32.mrb[9].mxu1 }
 0x393   : > { %v2784_v22 = vadd.f32 %v2783_v28, %v2782_v37  ;;  %v2785_v15 = vpop.f32.mrb[10].mxu1  ;;  %v2043_v37 = vsel %vm1695_vm6, %v3513_v53, 0 }
 0x394   : > { %v2786_v24 = vpop.f32.mrb[11].mxu1 }
 0x395   : > { %v2787_v21 = vadd.f32 %v2786_v24, %v2785_v15 }
 0x39b   : > { %v2876_v20 = vpop.f32.mrb[68].mxu0 }
 0x39c   : > { %v1842_v25 = vpop.f32.mrb[69].mxu0 }
 0x39d   : > { %v1843_v26 = vadd.f32 %v2784_v22, %v1842_v25  ;;  %v2877_v0 = vpop.f32.mrb[70].mxu0  ;;  %v3514_v22 = vld [vmem:[%s4722_s3 + $0x38] sm:$0xff]  }
 0x39e   : > { %v1845_v1 = vpop.f32.mrb[71].mxu0 }
 0x39f   : > { %v4512_v40 = vmax.f32 %v1838_v56, %v1843_v26  ;;  %v1846_v38 = vadd.f32 %v2787_v21, %v1845_v1  ;;  %v3516_v1 = vld [vmem:[%s4722_s3 + $0x48] sm:$0xff]  }
 0x3a1   : > { %1903 = vrot.lane.b32.xlu1 %v4512_v40, %s3609_s11 }
 0x3a2   : > { %v2788_v3 = vpop.f32.mrb[12].mxu1 }
 0x3a3   : > { %v2789_v33 = vpop.f32.mrb[13].mxu1 }
 0x3a4   : > { %v2790_v41 = vadd.f32 %v2789_v33, %v2788_v3  ;;  %v2791_v35 = vpop.f32.mrb[14].mxu1  ;;  %v3517_v3 = vld [vmem:[%s4722_s3 + $0x50] ss:$0 sps:$4 sm:$0xff]   ;;  %v3534_v33 = vld [vmem:[%s4723_s4] sm:$0xff]  }
 0x3a5   : > { %v2792_v57 = vpop.f32.mrb[15].mxu1  ;;  %2971 = vmatpush3.bf16.msra.mxu0 %v3534_v33 }
 0x3a6   : > { %v1851_v39 = vadd.f32 %v2876_v20, %v2790_v41  ;;  %v2793_v43 = vadd.f32 %v2792_v57, %v2791_v35  ;;  %v3515_v20 = vld [vmem:[%s4722_s3 + $0x40] sm:$0xff]   ;;  %v2119_v35 = vsel %vm1695_vm6, %v3517_v3, 0  ;;  %2972 = vmatprep.subr.bf16.mxu0 %v3608_v30  ;;  %v3518_v57 = vld [vmem:[%s4722_s3 + $0x54] sm:$0xff]  }
 0x3a8   : > { %v1854_v13 = vadd.f32 %v2877_v0, %v2793_v43  ;;  %v4516_v50 = vmax.f32 %v1846_v38, %v1851_v39  ;;  %v3519_v43 = vld [vmem:[%s4722_s3 + $0x5c] sm:$0xff]  }
 0x3aa   : > { %1905 = vrot.lane.b32.xlu0 %v4516_v50, %s3609_s11 }
 0x3f4   : > { %v2794_v51 = vpop.f32.mrb[16].mxu1 }
 0x3f5   : > { %v2795_v52 = vpop.f32.mrb[17].mxu1 }
 0x3f6   : > { %v2796_v54 = vadd.f32 %v2795_v52, %v2794_v51  ;;  %v2797_v12 = vpop.f32.mrb[18].mxu1  ;;  %v3520_v51 = vld [vmem:[%s4722_s3 + $0x64] sm:$0xff]  }
 0x3f7   : > { %v2798_v4 = vpop.f32.mrb[19].mxu1  ;;  %v1900_v6 = vpop.permute.xlu0 %1899 }
 0x3f8   : > { %v2799_v27 = vadd.f32 %v2798_v4, %v2797_v12  ;;  %v1920_v9 = vmax.f32 %v1885_v36, %v1900_v6 }
 0x3fa   : > { %v1927_v29 = vmax.f32 %v1920_v9, 0.0 }
 0x3fb   : > { %v1902_v60 = vpop.permute.xlu1 %1901 }
 0x3fc   : > { %v2880_v47 = vpop.f32.mrb[72].mxu0  ;;  %v1921_v55 = vmax.f32 %v1886_v34, %v1902_v60  ;;  %v1934_v15 = vpack.c.bf16 %v1927_v29, %v1927_v29 }
 0x3fd   : > { %v1858_v5 = vpop.f32.mrb[73].mxu0 }
 0x3fe   : > { %v1859_v58 = vadd.f32 %v2796_v54, %v1858_v5  ;;  %v2881_v10 = vpop.f32.mrb[74].mxu0  ;;  %v1928_v32 = vmax.f32 %v1921_v55, 0.0  ;;  %v3521_v54 = vld [vmem:[%s4722_s3 + $0x6c] ss:$0 sps:$4 sm:$0xff]   ;;  %v3525_v55 = vld [vmem:[%s4722_s3 + $0x88] ss:$0 sps:$4 sm:$0xff]  }
 0x3ff   : > { %v1861_v59 = vpop.f32.mrb[75].mxu0  ;;  %v2196_v4 = vsel %vm1695_vm6, %v3521_v54, 0  ;;  %v2273_v5 = vsel %vm1695_vm6, %v3525_v55, 0 }
 0x400   : > { %v4520_v46 = vmax.f32 %v1854_v13, %v1859_v58  ;;  %v1862_v63 = vadd.f32 %v2799_v27, %v1861_v59  ;;  %v1942_v2 = vpack.c.bf16 %v1928_v32, %v1928_v32  ;;  %v3522_v27 = vld [vmem:[%s4722_s3 + $0x70] sm:$0xff]  }
 0x401   : > { %v3526_v59 = vld [vmem:[%s4722_s3 + $0x8c] sm:$0xff]  }
 0x402   : > { %1907 = vrot.lane.b32.xlu1 %v4520_v46, %s3609_s11  ;;  %2895 = vmatmul.mubr.msk.bf16.vlgmr.msra.gmra.mrb[32].mxu1 %vm784_vm2, %v1942_v2 }
 0x403   : > { %v2800_v49 = vpop.f32.mrb[20].mxu1  ;;  %2899 = vmatpush3.bf16.msra.mxu1 %v3510_v44  ;;  %2906 = vmatprep.mubr.msk.bf16.mxu1 %vm3612_vm10, %v3608_v30  ;;  %v3527_v44 = vld [vmem:[%s4722_s3 + $0x94] sm:$0xff]  }
 0x404   : > { %v2801_v11 = vpop.f32.mrb[21].mxu1  ;;  %v2884_v48 = vpop.f32.mrb[76].mxu0  ;;  %2900 = vmatprep.subr.bf16.mxu1 %v3608_v30 }
 0x405   : > { %v2802_v8 = vadd.f32 %v2801_v11, %v2800_v49  ;;  %v2803_v17 = vpop.f32.mrb[22].mxu1  ;;  %v1874_v61 = vpop.f32.mrb[77].mxu0  ;;  %v3529_v49 = vld [vmem:[%s4722_s3 + $0xa4] ss:$0 sps:$4 sm:$0xff]  }
 0x406   : > { %v2804_v14 = vpop.f32.mrb[23].mxu1  ;;  %v2885_v16 = vpop.f32.mrb[78].mxu0  ;;  %v2350_v48 = vsel %vm1695_vm6, %v3529_v49, 0 }
 0x407   : > { %v1867_v7 = vadd.f32 %v2880_v47, %v2802_v8  ;;  %v2805_v31 = vadd.f32 %v2804_v14, %v2803_v17  ;;  %v1876_v42 = vpop.f32.mrb[79].mxu0  ;;  %2901 = vmatpush3.bf16.msra.mxu1 %v3511_v62  ;;  %v3524_v47 = vld [vmem:[%s4722_s3 + $0x80] sm:$0xff]   ;;  %v3530_v62 = vld [vmem:[%s4722_s3 + $0xa8] sm:$0xff]   ;;  %v3531_v17 = vld [vmem:[%s4722_s3 + $0xb0] sm:$0xff]  }
 0x408   : > { %2902 = vmatprep.subr.bf16.mxu1 %v3608_v30  ;;  %v3532_v14 = vld [vmem:[%s4722_s3 + $0xb8] sm:$0xff]  }
 0x409   : > { %v4539_v23 = vadd.f32 %v2881_v10, %v2805_v31  ;;  %v4542_v18 = vmax.f32 %v1862_v63, %v1867_v7  ;;  %v3533_v7 = vld [vmem:[%s4722_s3 + $0xc0] ss:$0 sps:$4 sm:$0xff]  }
 0x40a   : > { %v2427_v42 = vsel %vm1695_vm6, %v3533_v7, 0 }
 0x40b   : > { %v1891_v19 = vmax.f32 %v4539_v23, 0.0  ;;  %v2806_v34 = vpop.f32.mrb[24].mxu1  ;;  %1909 = vrot.lane.b32.xlu0 %v4542_v18, %s3609_s11  ;;  %2903 = vmatpush3.bf16.msra.mxu1 %v3512_v45 }
 0x40c   : > { %v2807_v56 = vpop.f32.mrb[25].mxu1  ;;  %2904 = vmatprep.subr.bf16.mxu1 %v3608_v30 }
 0x40d   : > { %v2809_v36 = vpop.f32.mrb[26].mxu1  ;;  %1911 = vrot.lane.b32.xlu1 %v1891_v19, %s3609_s11 }
 0x40e   : > { %v2810_v28 = vpop.f32.mrb[27].mxu1 }
 0x40f   : > { %2905 = vmatpush3.bf16.msra.mxu1 %v2043_v37 }
 0x410   : > { %2910 = vmatprep.subr.bf16.mxu1 %v3608_v30 }
 0x412   : > { %2907 = vmatmul.mubr.msk.bf16.vlgmr.msra.gmra.mrb[32].mxu1 %vm784_vm2, %v1934_v15 }
 0x413   : > { %v2812_v24 = vpop.f32.mrb[28].mxu1  ;;  %2911 = vmatpush3.bf16.msra.mxu1 %v3514_v22  ;;  %2918 = vmatprep.mubr.msk.bf16.mxu1 %vm3612_vm10, %v3608_v30  ;;  %v1904_v26 = vpop.permute.xlu1 %1903 }
 0x414   : > { %v2813_v21 = vpop.f32.mrb[29].mxu1  ;;  %2912 = vmatprep.subr.bf16.mxu1 %v3608_v30  ;;  %v1922_v38 = vmax.f32 %v4512_v40, %v1904_v26  ;;  %v3535_v40 = vld [vmem:[%s4723_s4 + $0x8] sm:$0xff]  }
 0x415   : > { %v2815_v25 = vpop.f32.mrb[30].mxu1  ;;  %2973 = vmatpush3.bf16.msra.mxu0 %v3535_v40 }
 0x416   : > { %v2816_v0 = vpop.f32.mrb[31].mxu1  ;;  %v1929_v41 = vmax.f32 %v1922_v38, 0.0 }
 0x417   : > { %2913 = vmatpush3.bf16.msra.mxu1 %v3515_v20 }
 0x418   : > { %2914 = vmatprep.subr.bf16.mxu1 %v3608_v30  ;;  %v2085_v39 = vpack.c.bf16 %v1929_v41, %v1929_v41 }
 0x41b   : > { %2915 = vmatpush3.bf16.msra.mxu1 %v3516_v1 }
 0x41c   : > { %2916 = vmatprep.subr.bf16.mxu1 %v3608_v30  ;;  %v1906_v13 = vpop.permute.xlu0 %1905 }
 0x41d   : > { %v1923_v52 = vmax.f32 %v4516_v50, %v1906_v13  ;;  %v3523_v50 = vld [vmem:[%s4722_s3 + $0x78] sm:$0xff]  }
 0x41f   : > { %2917 = vmatpush3.bf16.msra.mxu1 %v2119_v35  ;;  %v1930_v12 = vmax.f32 %v1923_v52, 0.0 }
 0x420   : > { %2922 = vmatprep.subr.bf16.mxu1 %v3608_v30 }
 0x421   : > { %v2162_v60 = vpack.c.bf16 %v1930_v12, %v1930_v12 }
 0x422   : > { %2919 = vmatmul.mubr.msk.bf16.vlgmr.msra.gmra.mrb[32].mxu1 %vm784_vm2, %v2085_v39 }
 0x423   : > { %2923 = vmatpush3.bf16.msra.mxu1 %v3518_v57  ;;  %2930 = vmatprep.mubr.msk.bf16.mxu1 %vm3612_vm10, %v3608_v30 }
 0x424   : > { %2924 = vmatprep.subr.bf16.mxu1 %v3608_v30 }
 0x427   : > { %2925 = vmatpush3.bf16.msra.mxu1 %v3519_v43 }
 0x428   : > { %2926 = vmatprep.subr.bf16.mxu1 %v3608_v30 }
 0x42b   : > { %2927 = vmatpush3.bf16.msra.mxu1 %v3520_v51 }
 0x42c   : > { %2928 = vmatprep.subr.bf16.mxu1 %v3608_v30 }
 0x42f   : > { %2929 = vmatpush3.bf16.msra.mxu1 %v2196_v4 }
 0x430   : > { %2934 = vmatprep.subr.bf16.mxu1 %v3608_v30 }
 0x432   : > { %2931 = vmatmul.mubr.msk.bf16.vlgmr.msra.gmra.mrb[32].mxu1 %vm784_vm2, %v2162_v60 }
 0x433   : > { %2935 = vmatpush3.bf16.msra.mxu1 %v3522_v27  ;;  %2942 = vmatprep.mubr.msk.bf16.mxu1 %vm3612_vm10, %v3608_v30 }
 0x434   : > { %2936 = vmatprep.subr.bf16.mxu1 %v3608_v30 }
 0x437   : > { %2937 = vmatpush3.bf16.msra.mxu1 %v3523_v50 }
 0x438   : > { %2938 = vmatprep.subr.bf16.mxu1 %v3608_v30 }
 0x43b   : > { %2939 = vmatpush3.bf16.msra.mxu1 %v3524_v47 }
 0x43c   : > { %2940 = vmatprep.subr.bf16.mxu1 %v3608_v30 }
 0x43f   : > { %2941 = vmatpush3.bf16.msra.mxu1 %v2273_v5 }
 0x440   : > { %2946 = vmatprep.subr.bf16.mxu1 %v3608_v30 }
 0x474   : > { %v1908_v58 = vpop.permute.xlu1 %1907 }
 0x475   : > { %v1924_v10 = vmax.f32 %v4520_v46, %v1908_v58  ;;  %v3528_v46 = vld [vmem:[%s4722_s3 + $0x9c] sm:$0xff]  }
 0x477   : > { %v1931_v32 = vmax.f32 %v1924_v10, 0.0 }
 0x479   : > { %v2239_v63 = vpack.c.bf16 %v1931_v32, %v1931_v32 }
 0x47b   : > { %2943 = vmatmul.mubr.msk.bf16.vlgmr.msra.gmra.mrb[32].mxu1 %vm784_vm2, %v2239_v63 }
 0x47c   : > { %2947 = vmatpush3.bf16.msra.mxu1 %v3526_v59  ;;  %2954 = vmatprep.mubr.msk.bf16.mxu1 %vm3612_vm10, %v3608_v30 }
 0x47d   : > { %2948 = vmatprep.subr.bf16.mxu1 %v3608_v30  ;;  %v1910_v2 = vpop.permute.xlu0 %1909 }
 0x47e   : > { %v1925_v6 = vmax.f32 %v4542_v18, %v1910_v2 }
 0x47f   : > { %v1912_v61 = vpop.permute.xlu1 %1911 }
 0x480   : > { %2949 = vmatpush3.bf16.msra.mxu1 %v3527_v44  ;;  %v1932_v11 = vmax.f32 %v1925_v6, 0.0  ;;  %v1926_v16 = vmax.f32 %v1891_v19, %v1912_v61 }
 0x481   : > { %2950 = vmatprep.subr.bf16.mxu1 %v3608_v30 }
 0x482   : > { %v2316_v8 = vpack.c.bf16 %v1932_v11, %v1932_v11  ;;  %v1933_v31 = vmax.f32 %v1926_v16, 0.0 }
 0x484   : > { %2951 = vmatpush3.bf16.msra.mxu1 %v3528_v46  ;;  %v2393_v45 = vpack.c.bf16 %v1933_v31, %v1933_v31 }
 0x485   : > { %2952 = vmatprep.subr.bf16.mxu1 %v3608_v30 }
 0x488   : > { %2953 = vmatpush3.bf16.msra.mxu1 %v2350_v48 }
 0x489   : > { %2958 = vmatprep.subr.bf16.mxu1 %v3608_v30 }
 0x48b   : > { %2955 = vmatmul.mubr.msk.bf16.vlgmr.msra.gmra.mrb[32].mxu1 %vm784_vm2, %v2316_v8 }
 0x48c   : > { %2959 = vmatpush3.bf16.msra.mxu1 %v3530_v62  ;;  %2966 = vmatprep.mubr.msk.bf16.mxu1 %vm3612_vm10, %v3608_v30 }
 0x48d   : > { %2960 = vmatprep.subr.bf16.mxu1 %v3608_v30 }
 0x490   : > { %2961 = vmatpush3.bf16.msra.mxu1 %v3531_v17 }
 0x491   : > { %2962 = vmatprep.subr.bf16.mxu1 %v3608_v30 }
 0x494   : > { %2963 = vmatpush3.bf16.msra.mxu1 %v3532_v14 }
 0x495   : > { %2964 = vmatprep.subr.bf16.mxu1 %v3608_v30 }
 0x498   : > { %2965 = vmatpush3.bf16.msra.mxu1 %v2427_v42 }
 0x49b   : > { %2967 = vmatmul.mubr.msk.bf16.vlgmr.msra.gmra.mrb[32].mxu1 %vm784_vm2, %v2393_v45 }
 0x56e   : > { %v2463_v9 = vpop.f32.mrb[32].mxu1 }
 0x56f   : > { %v2470_v23 = vmax.f32 %v2463_v9, 0.0  ;;  %v2968_v18 = vpop.f32.mrb[33].mxu1 }
 0x570   : > { %v2466_v53 = vpop.f32.mrb[34].mxu1 }
 0x571   : > { %v2471_v19 = vpack.c.bf16 %v2470_v23, %v2470_v23  ;;  %v2969_v34 = vpop.f32.mrb[35].mxu1 }
 0x573   : > { %2975 = vmatmul.mubr.msk.bf16.vlgmr.msra.gmra.mrb[80].mxu0 %vm2488_vm11, %v2471_v19 }
 0x646   : > { %v2526_v30 = vpop.f32.mrb[80].mxu0 }
 0x647   : > { %2533 = vst.msk [vmem:[%s364_s17] sm:$0xff] %vm2532_vm12, %v2526_v30  ;;  %v2976_v56 = vpop.f32.mrb[81].mxu0 }
 0x648   : > { %v2529_v29 = vpop.f32.mrb[82].mxu0 }
 0x649   : > { %3552 = shalt.err (!%p3549_p5)
}
 0x64a   : > { %s3553_s12 = scalar_lea.hbm %s4675_s26, 128  ;;  %s3557_s16 = scalar_lea.hbm %s4724_s5, 256 }
 0x64b   : > { %p3554_p7 = scmp.ne.s32.totalorder %s4675_s26, %s3553_s12  ;;  %p3558_p12 = scmp.lt.u32.totalorder %s4675_s26, %s4724_s5 }
 0x64c   : > { %p3559_p13 = scmp.lt.u32.totalorder %s3557_s16, %s3553_s12  ;;  %p3561_p1 = scmp.lt.u32.totalorder %s3553_s12, %s4675_s26 }
 0x64d   : > { %p3555_p10 = pnand %p3554_p7, %p3682_p6 }
 0x64e   : > { %p3560_p0 = por %p3559_p13, %p3558_p12 }
 0x64f   : > { %p3556_p11 = pneg %p3555_p10 }
 0x650   : > { %p3562_p2 = por %p3561_p1, %p3560_p0 }
 0x652   : > { %p3563_p3 = pnand %p3562_p2, %p3556_p11 }
 0x654   : > { %3566 = shalt.err (!%p3563_p3)
}
 0x655   : > { %3005 = dma.vmem_to_hbm [thread:$0]  (%p3682_p6), %s4677_s6, 128, %s4675_s26, %s2535_s7   ;;  %v2977_v36 = vpop.f32.mrb[83].mxu0 }
 0x656 PF: > { %s2560_s10 = sand.u32 1, %s3589_s18   ;;  %p3008_p4 = pnand %p2615_p9, %p3686_p8 }
 0x657   : > { %s2561_s17 = scalar_lea.sflag [#allocation4], %s2560_s10 }
 0x658   : > { %3584 = dma.done.wait (!%p3008_p4), %s2561_s17, 128  }
 0x659   : > { %3586 = vsyncadd (!%p3008_p4), %s2561_s17, 4294967168  ;;  %p15_p5 = scmp.ge.s32.totalorder %s3667_s24, 4   ;;  %s4727_s18 = smov %s3593_s19 }
 0x65a   : > { %s4728_s19 = smov %s3597_s20  ;;  %s4729_s20 = smov %s3680_s27 }
 0x65b   : > { %s4730_s21 = smov %s3667_s24  ;;  %17 = sbr.rel (!%p15_p5) target bundleno = 3 (0x3), region = 124 }
 0x662   :  { %2566 = vsyncpa [#allocation4], 1 }
 0x663   :  { %2568 = vsyncpa [#allocation4 + $0x1], 1 }

</bundles_post_ra>
